<compile_context>
chip_gen: v7x
topology: tpu7x:2x2x1
jax: 0.10.0
libtpu: 0.0.40
codegen_flags: <defaults>
</compile_context>

<pallas_src>
import jax
import jax.numpy as jnp
from jax.experimental import pallas as pl
from jax.experimental.pallas import tpu as pltpu

F1 = 16   # n_time_filters_signal
F2 = 40   # n_time_filters_template
KT = 9    # time_conv_kernel


def _glorot(key, shape, fan_in, fan_out):
    limit = (6.0 / (fan_in + fan_out)) ** 0.5
    return jax.random.uniform(key, shape, jnp.float32, minval=-limit, maxval=limit)


def init_convca_params(key, n_channels, n_classes):
    """Glorot weights, zero biases (matches _glorot_weight_zero_bias). Torch layouts."""
    C, Nc = n_channels, n_classes
    ks = jax.random.split(key, 6)
    return dict(
        w1=_glorot(ks[0], (F1, 1, C, KT), 1 * C * KT, F1 * C * KT),   # signal conv1
        b1=jnp.zeros((F1,), jnp.float32),
        w2=_glorot(ks[1], (1, F1, C, 1), F1 * C, 1 * C),              # signal conv2
        b2=jnp.zeros((1,), jnp.float32),
        w3=_glorot(ks[2], (1, 1, C, 1), C, C),                        # signal conv3
        b3=jnp.zeros((1,), jnp.float32),
        wt1=_glorot(ks[3], (F2, C, 1, KT), C * KT, F2 * KT),          # template conv1
        bt1=jnp.zeros((F2,), jnp.float32),
        wt2=_glorot(ks[4], (1, F2, 1, KT), F2 * KT, 1 * KT),          # template conv2
        bt2=jnp.zeros((1,), jnp.float32),
        fcw=_glorot(ks[5], (Nc, Nc), Nc, Nc),                         # Linear(Nc, Nc)
        fcb=jnp.zeros((Nc,), jnp.float32),
    )


def _round_up(x, m):
    return ((x + m - 1) // m) * m


def _fold_params(params, C, S, Spa, Sp2a, Sa):
    """Fold the (linear, eval-mode) conv stacks into banded MXU operands.

    Returns:
      Ms  [Cp*Spa,  Sa]  signal banded matrix      x[b,s]  = (Xp_flat @ Ms)[b,s] + b_sig
      Mt  [C*Sp2a,  Sa]  template banded matrix    tf[r,s] = (Tp_flat @ Mt)[r,s] + b_tmpl[s]
      bias_pack [2, Sa]  row0 = b_sig (masked to s<S), row1 = b_tmpl (masked)
    """
    f32 = jnp.float32
    pt = (C - 1) // 2
    pw = (KT - 1) // 2
    Cp = 2 * C - 1
    L = 2 * KT - 1

    w1m = params["w1"][:, 0].astype(f32)           # [F1, C, KT]
    w2m = params["w2"][0, :, :, 0].astype(f32)     # [F1, C]
    w3v = params["w3"][0, 0, :, 0].astype(f32)     # [C]
    wt1m = params["wt1"][:, :, 0, :].astype(f32)   # [F2, C, KT]
    wt2m = params["wt2"][0, :, 0, :].astype(f32)   # [F2, KT]
    b1 = params["b1"].astype(f32)
    b2 = params["b2"].astype(f32)[0]
    b3 = params["b3"].astype(f32)[0]
    bt1 = params["bt1"].astype(f32)
    bt2 = params["bt2"].astype(f32)[0]

    # --- signal: conv3∘conv2∘conv1 -> one (Cp, KT) filter + scalar bias (exact)
    full_conv = jax.vmap(lambda v: jnp.convolve(w3v, v, mode="full"))(w2m)  # [F1, 2C-1]
    A = full_conv[:, pt:pt + C].T                                           # [C, F1]
    B1 = jnp.einsum("mf,fpj->mpj", A, w1m)                                  # [C, C, KT]
    w_sig = jnp.zeros((Cp, KT), f32)
    for m in range(C):
        w_sig = w_sig.at[m:m + C, :].add(B1[m])
    b_sig = b3 + b2 * jnp.sum(w3v) + jnp.einsum("mf,f->", A, b1)

    # --- template: conv2∘conv1 -> position dependent composite filter (exact;
    #     the s-dependence encodes the truncation by the intermediate padding).
    G = jnp.einsum("fj,fcp->jcp", wt2m, wt1m)                               # [KT, C, KT]
    s_idx = jnp.arange(S)[None, :]
    j_idx = jnp.arange(KT)[:, None]
    V = ((s_idx >= (pw - j_idx)) & (s_idx < (S + pw - j_idx))).astype(f32)  # [KT, S]
    w_tmpl = jnp.zeros((C, L, S), f32)
    for j in range(KT):
        w_tmpl = w_tmpl.at[:, j:j + KT, :].add(G[j][:, :, None] * V[j][None, None, :])
    b_tmpl = bt2 + jnp.einsum("f,fj,js->s", bt1, wt2m, V)                   # [S]

    # --- banded matmul operands (columns s >= S are zero so padded lanes stay 0)
    s_ar = jnp.arange(S)
    Ms = jnp.zeros((Cp, Spa, Sa), f32)
    for j in range(KT):                       # Ms[q, s+j, s] = w_sig[q, j]
        Ms = Ms.at[:, s_ar + j, s_ar].set(jnp.broadcast_to(w_sig[:, j:j + 1], (Cp, S)))
    Mt = jnp.zeros((C, Sp2a, Sa), f32)
    for tau in range(L):                      # Mt[c, s+tau, s] = w_tmpl[c, tau, s]
        Mt = Mt.at[:, s_ar + tau, s_ar].set(w_tmpl[:, tau, :])

    lane = jnp.arange(Sa)
    b_sig_vec = jnp.where(lane < S, b_sig, 0.0).astype(f32)                 # [Sa]
    b_tmpl_vec = jnp.zeros((Sa,), f32).at[:S].set(b_tmpl)                   # [Sa]
    bias_pack = jnp.stack([b_sig_vec, b_tmpl_vec], axis=0)                  # [2, Sa]

    return Ms.reshape(Cp * Spa, Sa), Mt.reshape(C * Sp2a, Sa), bias_pack


def _convca_kernel(xp_ref, tp_ref, ms_ref, mt_ref, bias_ref, e_ref, bd_ref,
                   fcb_ref, o_ref):
    f32 = jnp.float32
    # signal features: one MXU matmul against the folded banded filter
    x = jnp.dot(xp_ref[...], ms_ref[...], preferred_element_type=f32)
    x = x + bias_ref[0:1, :]                                    # [Bt, Sa]
    # replicate per class with a tiny MXU matmul (avoids an in-kernel relayout)
    x_rep = jnp.dot(e_ref[...], x, preferred_element_type=f32)  # [R, Sa]
    # template features: one MXU matmul against the folded banded filter
    tf = jnp.dot(tp_ref[...], mt_ref[...], preferred_element_type=f32)
    tf = tf + bias_ref[1:2, :]                                  # [R, Sa]
    # correlation layer (rsqrt on the EUP; the guard only fires for zero-energy
    # rows, where the PyTorch reference would produce NaN)
    corr_xt = jnp.sum(tf * x_rep, axis=-1, keepdims=True)       # [R, 1]
    corr_xx = jnp.sum(x_rep * x_rep, axis=-1, keepdims=True)    # [R, 1]
    corr_tt = jnp.sum(tf * tf, axis=-1, keepdims=True)          # [R, 1]
    denom = corr_xx * corr_tt
    corr = jnp.where(denom > 0.0,
                     corr_xt * jax.lax.rsqrt(jnp.maximum(denom, 1e-30)),
                     0.0)                                       # [R, 1]
    # fc layer as a block-diagonal kron(I_Bt, W) matmul -> flat [R, 1] logits
    o_ref[...] = (jnp.dot(bd_ref[...], corr, preferred_element_type=f32)
                  + fcb_ref[...])


def convca_forward(params, X, T, *, compute_dtype=jnp.float32, batch_tile=None,
                   vmem_budget_bytes=40 << 20):
    f32 = jnp.float32
    B, C, S = X.shape
    Nc = T.shape[2]
    pt = (C - 1) // 2
    pb = (C - 1) - pt
    pw = (KT - 1) // 2
    Cp = 2 * C - 1               # padded channel extent seen by the folded signal filter
    Sp = S + 2 * pw              # signal time extent after "same" padding
    Sp2 = S + 4 * pw             # template time extent after double "same" padding
    Sa = _round_up(S, 128)       # lane-aligned output time axis
    Spa = _round_up(Sp, 128)     # lane-aligned padded signal time axis
    Sp2a = _round_up(Sp2, 128)   # lane-aligned padded template time axis

    # -------------------------------------------------------------- host fold
    Ms, Mt, bias_pack = _fold_params(params, C, S, Spa, Sp2a, Sa)

    # ------------------------------------------ batch tile from a VMEM budget
    itemsize = jnp.dtype(compute_dtype).itemsize
    per_b = (2 * (Cp * Spa + Nc * C * Sp2a) * itemsize     # double-buffered input blocks
             + (2 * Nc * Sa + Sa) * 4                      # f32 intermediates (x_rep, tf, x)
             + 2 * Nc * 4)                                 # output block
    const_b = 2 * (Ms.size + Mt.size) * itemsize + 2 * bias_pack.size * 4
    if batch_tile is not None:
        Bt = int(batch_tile)
    elif B <= 8:
        Bt = B                                             # full batch, blocks = full dims
    else:
        cap = max(8, (vmem_budget_bytes - const_b) // max(per_b, 1))
        cap = min(cap, max(8, 2048 // max(Nc, 1)))         # keep kron(I_Bt, fcw) small
        cap = min(cap, pl.cdiv(B, 2))                      # >=2 grid steps (2 TCs on v7x)
        Bt = int(max(8, (cap // 8) * 8))                   # multiple of 8 (sublane rule)
    Bp = _round_up(B, Bt)
    if Bp != B:
        # edge-pad (not zero-pad) so padded rows stay finite; they are sliced off.
        X = jnp.concatenate([X, jnp.repeat(X[-1:], Bp - B, axis=0)], axis=0)
        T = jnp.concatenate([T, jnp.repeat(T[-1:], Bp - B, axis=0)], axis=0)
    R = Bt * Nc
    grid = (Bp // Bt,)

    # -------------------------------------------- host data layout (pure glue)
    Xp = jnp.pad(X.astype(f32), ((0, 0), (pt, pb), (pw, Spa - Sp + pw)))
    Xp_flat = Xp.reshape(Bp, Cp * Spa).astype(compute_dtype)            # [Bp, Cp*Spa]
    Tp = jnp.pad(T.astype(f32),
                 ((0, 0), (0, 0), (0, 0), (2 * pw, Sp2a - Sp2 + 2 * pw)))
    Tp_flat = (jnp.transpose(Tp, (0, 2, 1, 3))
               .reshape(Bp * Nc, C * Sp2a).astype(compute_dtype))       # [Bp*Nc, C*Sp2a]

    Ms = Ms.astype(compute_dtype)
    Mt = Mt.astype(compute_dtype)
    E = jnp.repeat(jnp.eye(Bt, dtype=f32), Nc, axis=0)                  # [R, Bt]
    BD = jnp.kron(jnp.eye(Bt, dtype=f32), params["fcw"].astype(f32))    # [R, R]
    fcb_col = jnp.tile(params["fcb"].astype(f32), Bt)[:, None]          # [R, 1]

    # explicit VMEM limit only when the blocks actually need more than default
    cparams = dict(dimension_semantics=("parallel",))
    vmem_est = int(const_b + Bt * per_b)
    if vmem_est > (24 << 20):
        cparams["vmem_limit_bytes"] = int(min(vmem_est + (8 << 20), 100 << 20))

    # NOTE: the grid-invariant operands (Ms/Mt/bias/E/BD/fcb) use a constant
    # index_map, so they are DMA'd once and stay resident across grid steps.
    out_flat = pl.pallas_call(
        _convca_kernel,
        out_shape=jax.ShapeDtypeStruct((Bp * Nc, 1), f32),
        grid=grid,
        in_specs=[
            pl.BlockSpec((Bt, Cp * Spa), lambda g: (g, 0)),        # Xp_flat
            pl.BlockSpec((R, C * Sp2a), lambda g: (g, 0)),         # Tp_flat (dominant DMA)
            pl.BlockSpec((Cp * Spa, Sa), lambda g: (0, 0)),        # Ms (resident)
            pl.BlockSpec((C * Sp2a, Sa), lambda g: (0, 0)),        # Mt (resident)
            pl.BlockSpec((2, Sa), lambda g: (0, 0)),               # bias_pack
            pl.BlockSpec((R, Bt), lambda g: (0, 0)),               # E  (class replication)
            pl.BlockSpec((R, R), lambda g: (0, 0)),                # BD (kron'd fc weight)
            pl.BlockSpec((R, 1), lambda g: (0, 0)),                # fcb_col
        ],
        out_specs=pl.BlockSpec((R, 1), lambda g: (g, 0)),
        compiler_params=pltpu.CompilerParams(**cparams),
    )(Xp_flat, Tp_flat, Ms, Mt, bias_pack, E, BD, fcb_col)

    return out_flat.reshape(Bp, Nc)[:B]                                # [B, Nc]


def convca_forward_ref(params, X, T):
    """Pure-JAX reference (mirrors the PyTorch module, eval mode)."""
    B, C, S = X.shape
    pt, pb, pw = (C - 1) // 2, (C - 1) - (C - 1) // 2, (KT - 1) // 2
    dn = ("NCHW", "OIHW", "NCHW")
    hp = jax.lax.Precision.HIGHEST

    x = X[:, None]
    x = jnp.pad(x, ((0, 0), (0, 0), (pt, pb), (pw, pw)))
    x = jax.lax.conv_general_dilated(x, params["w1"], (1, 1), "VALID",
                                     dimension_numbers=dn, precision=hp) \
        + params["b1"][None, :, None, None]
    x = jnp.pad(x, ((0, 0), (0, 0), (pt, pb), (0, 0)))
    x = jax.lax.conv_general_dilated(x, params["w2"], (1, 1), "VALID",
                                     dimension_numbers=dn, precision=hp) \
        + params["b2"][None, :, None, None]
    x = jax.lax.conv_general_dilated(x, params["w3"], (1, 1), "VALID",
                                     dimension_numbers=dn, precision=hp) \
        + params["b3"][None, :, None, None]                               # [B,1,1,S]

    t = jnp.pad(T, ((0, 0), (0, 0), (0, 0), (pw, pw)))
    t = jax.lax.conv_general_dilated(t, params["wt1"], (1, 1), "VALID",
                                     dimension_numbers=dn, precision=hp) \
        + params["bt1"][None, :, None, None]
    t = jnp.pad(t, ((0, 0), (0, 0), (0, 0), (pw, pw)))
    t = jax.lax.conv_general_dilated(t, params["wt2"], (1, 1), "VALID",
                                     dimension_numbers=dn, precision=hp) \
        + params["bt2"][None, :, None, None]                              # [B,1,Nc,S]

    tsw = jnp.swapaxes(t, -1, -2)
    corr_xt = jnp.matmul(x, tsw, precision=hp)
    corr_xx = jnp.sum(jnp.square(x), -1, keepdims=True)
    corr_tt = jnp.sum(jnp.square(tsw), -2, keepdims=True)
    corr = corr_xt / (jnp.sqrt(corr_xx) * jnp.sqrt(corr_tt))
    corr = corr.reshape(B, -1)
    return corr @ params["fcw"].T + params["fcb"]


if __name__ == "__main__":
    # small but non-trivial shapes: multi-step grid (Bt=8 -> 2 "parallel" steps),
    # unaligned S (exercises the 128-padding / masked-column path), odd Nc.
    B, C, S, Nc = 16, 4, 100, 5     # batch, n_channels, n_samples, n_classes
    key = jax.random.PRNGKey(0)
    kp, kx, kt = jax.random.split(key, 3)

    params = init_convca_params(kp, C, Nc)
    X = jax.random.normal(kx, (B, C, S), jnp.float32)            # signal
    T = jax.random.normal(kt, (B, C, Nc, S), jnp.float32)        # reference templates

    ref = jax.block_until_ready(convca_forward_ref(params, X, T))

    # f32 path (tolerance allows for MXU f32 pass decomposition differences)
    out = jax.block_until_ready(convca_forward(params, X, T))
    assert out.shape == (B, Nc), out.shape
    assert bool(jnp.allclose(out, ref, atol=3e-2, rtol=3e-2)), (out, ref)

    # bf16-input path (halves the dominant Tp HBM traffic; f32 accumulation)
    out_bf16 = jax.block_until_ready(
        convca_forward(params, X, T, compute_dtype=jnp.bfloat16))
    assert out_bf16.shape == (B, Nc), out_bf16.shape
    assert bool(jnp.allclose(out_bf16, ref, atol=1e-1, rtol=1e-1)), (out_bf16, ref)

    print("KERNEL_OK")
</pallas_src>

<mosaic_0001>
module attributes {stable_mosaic.version = 11 : i64} {
  func.func @_convca_kernel(%arg0: i32, %arg1: memref<8x896xf32, #tpu.memory_space<vmem>>, %arg2: memref<40x512xf32, #tpu.memory_space<vmem>>, %arg3: memref<896x128xf32, #tpu.memory_space<vmem>>, %arg4: memref<512x128xf32, #tpu.memory_space<vmem>>, %arg5: memref<2x128xf32, #tpu.memory_space<vmem>>, %arg6: memref<40x8xf32, #tpu.memory_space<vmem>>, %arg7: memref<40x40xf32, #tpu.memory_space<vmem>>, %arg8: memref<40x1xf32, #tpu.memory_space<vmem>>, %arg9: memref<40x1xf32, #tpu.memory_space<vmem>>) attributes {dimension_semantics = [#tpu.dimension_semantics<parallel>], iteration_bounds = array<i64: 2>, scalar_prefetch = 0 : i64, scratch_operands = 0 : i64, tpu.core_type = #tpu.core_type<tc>, window_params = [{transform_indices = @transform_0, window_bounds = array<i64: 8, 896>}, {transform_indices = @transform_1, window_bounds = array<i64: 40, 512>}, {pipeline_mode = #tpu.pipeline_mode<synchronous>, transform_indices = @transform_2, window_bounds = array<i64: 896, 128>}, {pipeline_mode = #tpu.pipeline_mode<synchronous>, transform_indices = @transform_3, window_bounds = array<i64: 512, 128>}, {pipeline_mode = #tpu.pipeline_mode<synchronous>, transform_indices = @transform_4, window_bounds = array<i64: 2, 128>}, {pipeline_mode = #tpu.pipeline_mode<synchronous>, transform_indices = @transform_5, window_bounds = array<i64: 40, 8>}, {pipeline_mode = #tpu.pipeline_mode<synchronous>, transform_indices = @transform_6, window_bounds = array<i64: 40, 40>}, {pipeline_mode = #tpu.pipeline_mode<synchronous>, transform_indices = @transform_7, window_bounds = array<i64: 40, 1>}, {transform_indices = @transform_8, window_bounds = array<i64: 40, 1>}]} {
    %c0 = arith.constant 0 : index
    %c0_0 = arith.constant 0 : index
    %0 = vector.load %arg1[%c0, %c0_0] : memref<8x896xf32, #tpu.memory_space<vmem>>, vector<8x896xf32>
    %c0_1 = arith.constant 0 : index
    %c0_2 = arith.constant 0 : index
    %1 = vector.load %arg3[%c0_1, %c0_2] : memref<896x128xf32, #tpu.memory_space<vmem>>, vector<896x128xf32>
    %cst = arith.constant dense<0.000000e+00> : vector<8x128xf32>
    %2 = tpu.matmul %0, %1, %cst {dimension_numbers = #tpu.dot_dimension_numbers<[1], [0], [0], [1], [0, 0, 1, 1], [], []>} : vector<8x896xf32>, vector<896x128xf32>, vector<8x128xf32> -> vector<8x128xf32>
    %c0_3 = arith.constant 0 : index
    %c0_4 = arith.constant 0 : index
    %3 = vector.load %arg5[%c0_3, %c0_4] : memref<2x128xf32, #tpu.memory_space<vmem>>, vector<1x128xf32>
    %4 = vector.broadcast %3 : vector<1x128xf32> to vector<8x128xf32>
    %5 = arith.addf %2, %4 : vector<8x128xf32>
    %c0_5 = arith.constant 0 : index
    %c0_6 = arith.constant 0 : index
    %6 = vector.load %arg6[%c0_5, %c0_6] : memref<40x8xf32, #tpu.memory_space<vmem>>, vector<40x8xf32>
    %cst_7 = arith.constant dense<0.000000e+00> : vector<40x128xf32>
    %7 = tpu.matmul %6, %5, %cst_7 {dimension_numbers = #tpu.dot_dimension_numbers<[1], [0], [0], [1], [0, 0, 1, 1], [], []>} : vector<40x8xf32>, vector<8x128xf32>, vector<40x128xf32> -> vector<40x128xf32>
    %c0_8 = arith.constant 0 : index
    %c0_9 = arith.constant 0 : index
    %8 = vector.load %arg2[%c0_8, %c0_9] : memref<40x512xf32, #tpu.memory_space<vmem>>, vector<40x512xf32>
    %c0_10 = arith.constant 0 : index
    %c0_11 = arith.constant 0 : index
    %9 = vector.load %arg4[%c0_10, %c0_11] : memref<512x128xf32, #tpu.memory_space<vmem>>, vector<512x128xf32>
    %cst_12 = arith.constant dense<0.000000e+00> : vector<40x128xf32>
    %10 = tpu.matmul %8, %9, %cst_12 {dimension_numbers = #tpu.dot_dimension_numbers<[1], [0], [0], [1], [0, 0, 1, 1], [], []>} : vector<40x512xf32>, vector<512x128xf32>, vector<40x128xf32> -> vector<40x128xf32>
    %c1 = arith.constant 1 : index
    %c0_13 = arith.constant 0 : index
    %11 = vector.load %arg5[%c1, %c0_13] : memref<2x128xf32, #tpu.memory_space<vmem>>, vector<1x128xf32>
    %12 = vector.broadcast %11 : vector<1x128xf32> to vector<40x128xf32>
    %13 = arith.addf %10, %12 : vector<40x128xf32>
    %14 = arith.mulf %13, %7 : vector<40x128xf32>
    %cst_14 = arith.constant dense<0.000000e+00> : vector<40xf32>
    %15 = vector.multi_reduction <add>, %14, %cst_14 [1] : vector<40x128xf32> to vector<40xf32>
    %16 = vector.shape_cast %15 : vector<40xf32> to vector<40x1xf32>
    %17 = arith.mulf %7, %7 : vector<40x128xf32>
    %cst_15 = arith.constant dense<0.000000e+00> : vector<40xf32>
    %18 = vector.multi_reduction <add>, %17, %cst_15 [1] : vector<40x128xf32> to vector<40xf32>
    %19 = vector.shape_cast %18 : vector<40xf32> to vector<40x1xf32>
    %20 = arith.mulf %13, %13 : vector<40x128xf32>
    %cst_16 = arith.constant dense<0.000000e+00> : vector<40xf32>
    %21 = vector.multi_reduction <add>, %20, %cst_16 [1] : vector<40x128xf32> to vector<40xf32>
    %22 = vector.shape_cast %21 : vector<40xf32> to vector<40x1xf32>
    %23 = arith.mulf %19, %22 : vector<40x1xf32>
    %cst_17 = arith.constant 0.000000e+00 : f32
    %24 = vector.broadcast %cst_17 : f32 to vector<40x1xf32>
    %25 = arith.cmpf ogt, %23, %24 : vector<40x1xf32>
    %cst_18 = arith.constant 1.000000e-30 : f32
    %26 = vector.broadcast %cst_18 : f32 to vector<40x1xf32>
    %27 = arith.maximumf %23, %26 : vector<40x1xf32>
    %28 = math.rsqrt %27 : vector<40x1xf32>
    %29 = arith.mulf %16, %28 : vector<40x1xf32>
    %cst_19 = arith.constant 0.000000e+00 : f32
    %30 = vector.broadcast %cst_19 : f32 to vector<40x1xf32>
    %31 = arith.select %25, %29, %30 : vector<40x1xi1>, vector<40x1xf32>
    %c0_20 = arith.constant 0 : index
    %c0_21 = arith.constant 0 : index
    %32 = vector.load %arg7[%c0_20, %c0_21] : memref<40x40xf32, #tpu.memory_space<vmem>>, vector<40x40xf32>
    %cst_22 = arith.constant dense<0.000000e+00> : vector<40x1xf32>
    %33 = tpu.matmul %32, %31, %cst_22 {dimension_numbers = #tpu.dot_dimension_numbers<[1], [0], [0], [1], [0, 0, 1, 1], [], []>} : vector<40x40xf32>, vector<40x1xf32>, vector<40x1xf32> -> vector<40x1xf32>
    %c0_23 = arith.constant 0 : index
    %c0_24 = arith.constant 0 : index
    %34 = vector.load %arg8[%c0_23, %c0_24] : memref<40x1xf32, #tpu.memory_space<vmem>>, vector<40x1xf32>
    %35 = arith.addf %33, %34 : vector<40x1xf32>
    %c0_25 = arith.constant 0 : index
    %c0_26 = arith.constant 0 : index
    %36 = vector.load %arg9[%c0_25, %c0_26] : memref<40x1xf32, #tpu.memory_space<vmem>>, vector<40x1xf32>
    tpu.vector_store %arg9[%c0_25, %c0_26], %35 {strides = array<i32>} : memref<40x1xf32, #tpu.memory_space<vmem>>, vector<40x1xf32>,
    return
  }
  func.func @transform_0(%arg0: i32) -> (i32, i32) {
    %c0_i32 = arith.constant 0 : i32
    %c0_i32_0 = arith.constant 0 : i32
    return %arg0, %c0_i32 : i32, i32
  }
  func.func @transform_1(%arg0: i32) -> (i32, i32) {
    %c0_i32 = arith.constant 0 : i32
    %c0_i32_0 = arith.constant 0 : i32
    return %arg0, %c0_i32 : i32, i32
  }
  func.func @transform_2(%arg0: i32) -> (i32, i32) {
    %c0_i32 = arith.constant 0 : i32
    %c0_i32_0 = arith.constant 0 : i32
    %c0_i32_1 = arith.constant 0 : i32
    return %c0_i32, %c0_i32_0 : i32, i32
  }
  func.func @transform_3(%arg0: i32) -> (i32, i32) {
    %c0_i32 = arith.constant 0 : i32
    %c0_i32_0 = arith.constant 0 : i32
    %c0_i32_1 = arith.constant 0 : i32
    return %c0_i32, %c0_i32_0 : i32, i32
  }
  func.func @transform_4(%arg0: i32) -> (i32, i32) {
    %c0_i32 = arith.constant 0 : i32
    %c0_i32_0 = arith.constant 0 : i32
    %c0_i32_1 = arith.constant 0 : i32
    return %c0_i32, %c0_i32_0 : i32, i32
  }
  func.func @transform_5(%arg0: i32) -> (i32, i32) {
    %c0_i32 = arith.constant 0 : i32
    %c0_i32_0 = arith.constant 0 : i32
    %c0_i32_1 = arith.constant 0 : i32
    return %c0_i32, %c0_i32_0 : i32, i32
  }
  func.func @transform_6(%arg0: i32) -> (i32, i32) {
    %c0_i32 = arith.constant 0 : i32
    %c0_i32_0 = arith.constant 0 : i32
    %c0_i32_1 = arith.constant 0 : i32
    return %c0_i32, %c0_i32_0 : i32, i32
  }
  func.func @transform_7(%arg0: i32) -> (i32, i32) {
    %c0_i32 = arith.constant 0 : i32
    %c0_i32_0 = arith.constant 0 : i32
    %c0_i32_1 = arith.constant 0 : i32
    return %c0_i32, %c0_i32_0 : i32, i32
  }
  func.func @transform_8(%arg0: i32) -> (i32, i32) {
    %c0_i32 = arith.constant 0 : i32
    %c0_i32_0 = arith.constant 0 : i32
    return %arg0, %c0_i32 : i32, i32
  }
}

</mosaic_0001>

<bundles_post_ra>
// kernel: tpu_custom_call.1
= control target key start
LH: loop header
LB: loop body
LE: loop exit
PB: predicated region body
PF: predicated region fallthrough
CT: control target
= control target key end

     0   :  { %s2688_s0 = inlined_call_operand.hbm [shape: f32[16,896], index: 0, kind: input, shape index: {}]   ;;  %s2689_s1 = inlined_call_operand.hbm [shape: f32[80,512], index: 1, kind: input, shape index: {}]   ;;  %s2690_s2 = inlined_call_operand.hbm [shape: f32[896,128], index: 2, kind: input, shape index: {}]   ;;  %s2691_s3 = inlined_call_operand.hbm [shape: f32[512,128], index: 3, kind: input, shape index: {}]   ;;  %s2692_s4 = inlined_call_operand.vmem [shape: f32[2,128], index: 4, kind: input, shape index: {}]   ;;  %s2693_s5 = inlined_call_operand.vmem [shape: f32[40,8], index: 5, kind: input, shape index: {}]   ;;  %s2694_s6 = inlined_call_operand.vmem [shape: f32[40,40], index: 6, kind: input, shape index: {}]   ;;  %s2695_s7 = inlined_call_operand.vmem [shape: f32[40,1], index: 7, kind: input, shape index: {}]   ;;  %s2696_s8 = inlined_call_operand.vmem [shape: f32[80,1], index: 8, kind: output, shape index: {}]  }
   0x1   :  { %2700 = sst [smem:[#allocation13_spill]] %s2688_s0 }
   0x2   :  { %13 = vsyncpa [#allocation3], 0 }
   0x3   :  { %15 = vsyncpa [#allocation3 + $0x1], 0 }
   0x4   :  { %16 = vsyncpa [#allocation5], 0 }
   0x5   :  { %18 = vsyncpa [#allocation5 + $0x1], 0 }
   0x6   :  { %19 = vsyncpa [#allocation8], 0  ;;  %s2335_s27 = smov 0   ;;  %s2337_s28 = smov 0  }
   0x7   :  { %s2339_s29 = smov 0   ;;  %s2341_s30 = smov 0  }
   0x8 LB: > { %s2354_s9 = sadd.s32 4294967295, %s2277_s30   ;;  %p45_p0 = scmp.ne.s32.totalorder %s2269_s28, %s2265_s27  ;;  %s2277_s30 = sphi %s2341_s30, %s2717_s30   ;;  %s2273_s29 = sphi %s2339_s29, %s2716_s29   ;;  %s2269_s28 = sphi %s2337_s28, %s2715_s28   ;;  %s2265_s27 = sphi %s2335_s27, %s2714_s27  }
   0x9   : > { %p2697_p1 = scmp.eq.s32.totalorder %s2354_s9, 0  ;;  %p1488_p2 = scmp.ge.s32.totalorder %s2277_s30, 1 }
   0xa   : > { %p234_p3 = scmp.lt.s32.totalorder %s2277_s30, 3  ;;  %s2279_s12 = smov [#allocation6]  }
   0xb   : > { %p2362_p4 = por %p2697_p1, %p45_p0  ;;  %s246_s13 = sshll.u32 %s2279_s12, 4  ;;  %s247_s13 = int_to_ptr.vmem [resolvable:$true] %s246_s13 }
   0xc   : > { %p2366_p5 = pnand %p1488_p2, %p234_p3  ;;  %s2280_s15 = smov [#allocation7]  }
   0xd   : > { %s2701_s10 = scalar_select %p2362_p4, 1, 0 }
   0xe   : > { %s2702_s11 = scalar_select %p2366_p5, 1, 0 }
   0xf   : > { %p2045_p6 = pneg %p2366_p5  ;;  %s259_s16 = sshll.u32 %s2280_s15, 4  ;;  %s2378_s16 = int_to_ptr.vmem [resolvable:$true] %s259_s16 }
  0x10   : > { %s2115_s19 = scalar_lea.hbm %s2690_s2, 14336 }
  0x11   : > { %p2374_p7 = pnand %p2045_p6, %p2697_p1  ;;  %p2116_p8 = scmp.ne.s32.totalorder %s2690_s2, %s2115_s19 }
  0x12   : > { %p2122_p12 = scmp.lt.u32.totalorder %s2115_s19, %s2690_s2 }
  0x13   : > { %p2117_p9 = pneg %p2374_p7 }
  0x15   : > { %p2118_p10 = pnand %p2117_p9, %p2116_p8 }
  0x17   : > { %p2119_p11 = pneg %p2118_p10 }
  0x19   : > { %p2124_p13 = pnand %p2122_p12, %p2119_p11 }
  0x1b   : > { %2127 = shalt.err (!%p2124_p13)
}
  0x1c   : > { %s2128_s24 = scalar_lea.vmem %s247_s13, 14336  ;;  %p2136_p6 = scmp.lt.s32.totalorder %s247_s13, %s247_s13 }
  0x1d   : > { %p2129_p0 = scmp.ne.s32.totalorder %s247_s13, %s2128_s24  ;;  %p2137_p1 = scmp.lt.s32.totalorder %s2128_s24, %s2128_s24 }
  0x1f   : > { %p2131_p2 = pnand %p2129_p0, %p2117_p9  ;;  %p2138_p4 = por %p2137_p1, %p2136_p6 }
  0x21   : > { %p2132_p3 = pneg %p2131_p2 }
  0x23   : > { %p2139_p5 = pnand %p2138_p4, %p2132_p3 }
  0x25   : > { %2142 = shalt.err (!%p2139_p5)
}
  0x26   : > { %s2281_s25 = smov 128   ;;  %s2282_s26 = smov 8  }
  0x27   : > { %2048 = dma.hbm_to_vmem [thread:$0]  (!%p2374_p7), %s2690_s2, 14336, %s247_s13, [#allocation5], %s2281_s25, %s2281_s25, %s2282_s26  }
  0x28   : > { %s2143_s18 = scalar_lea.hbm %s2691_s3, 8192 }
  0x29   : > { %p2144_p8 = scmp.ne.s32.totalorder %s2691_s3, %s2143_s18  ;;  %p2150_p5 = scmp.lt.u32.totalorder %s2143_s18, %s2691_s3 }
  0x2b   : > { %p2146_p1 = pnand %p2144_p8, %p2117_p9 }
  0x2d   : > { %p2147_p4 = pneg %p2146_p1 }
  0x2f   : > { %p2152_p10 = pnand %p2150_p5, %p2147_p4 }
  0x31   : > { %2155 = shalt.err (!%p2152_p10)
}
  0x32   : > { %s2156_s13 = scalar_lea.vmem %s2378_s16, 8192  ;;  %p2164_p0 = scmp.lt.s32.totalorder %s2378_s16, %s2378_s16 }
  0x33   : > { %p2157_p11 = scmp.ne.s32.totalorder %s2378_s16, %s2156_s13  ;;  %p2165_p2 = scmp.lt.s32.totalorder %s2156_s13, %s2156_s13 }
  0x35   : > { %p2159_p12 = pnand %p2157_p11, %p2117_p9  ;;  %p2166_p3 = por %p2165_p2, %p2164_p0 }
  0x37   : > { %p2160_p13 = pneg %p2159_p12 }
  0x39   : > { %p2167_p6 = pnand %p2166_p3, %p2160_p13 }
  0x3b   : > { %2170 = shalt.err (!%p2167_p6)
}
  0x3c   : > { %2051 = dma.hbm_to_vmem [thread:$0]  (!%p2374_p7), %s2691_s3, 8192, %s2378_s16, [#allocation8], %s2281_s25, %s2281_s25, %s2282_s26  }
  0x3d   : > { %s2428_s27 = sadd.s32 1, %s2277_s30   ;;  %s32_s14 = sadd.s32 1, %s2273_s29 }
  0x3e   : > { %s29_s12 = ssub.s32 %s2277_s30, %s2428_s27  ;;  %p39_p9 = scmp.ne.s32.totalorder %s2273_s29, %s2269_s28 }
  0x3f   : > { %p30_p8 = scmp.eq.s32.totalorder %s29_s12, 0  ;;  %p40_p1 = scmp.eq.s32.totalorder %s2277_s30, 0 }
  0x40   : > { %p2061_p4 = scmp.lt.s32.totalorder %s2277_s30, 2  ;;  %s2438_s15 = sand.u32 1, %s2273_s29  }
  0x41   : > { %s2441_s17 = scalar_select %p30_p8, %s2273_s29, %s32_s14  }
  0x42   : > { %p41_p5 = por %p40_p1, %p39_p9  ;;  %s2028_s18 = smul.u32 56, %s2438_s15 }
  0x43   : > { %s2029_s16 = smul.u32 896, %s2277_s30  ;;  %s2705_s0 = sld [smem:[#allocation13_spill]] }
  0x44   : > { %p2446_p7 = pnand %p2061_p4, %p41_p5  ;;  %s2030_s26 = smul.u32 160, %s2438_s15 }
  0x45   : > { %s289_s13 = scalar_lea.vmem [#allocation2], %s2028_s18  ;;  %s286_s24 = scalar_lea.sflag [#allocation3], %s2438_s15 }
  0x46   : > { %s297_s23 = sshll.u32 %s289_s13, 4  ;;  %p2173_p11 = pneg %p2446_p7  ;;  %s2456_s23 = int_to_ptr.vmem [resolvable:$true] %s297_s23 }
  0x49   : > { %s2454_s22 = scalar_lea.hbm %s2705_s0, %s2029_s16  ;;  %s2176_s20 = scalar_lea.hbm %s2705_s0, 1792 }
  0x4a   : > { %s2171_s14 = scalar_lea.hbm %s2454_s22, 896  ;;  %p2177_p0 = scmp.lt.u32.totalorder %s2454_s22, %s2705_s0 }
  0x4b   : > { %p2172_p10 = scmp.ne.s32.totalorder %s2454_s22, %s2171_s14  ;;  %p2178_p2 = scmp.lt.u32.totalorder %s2176_s20, %s2171_s14 }
  0x4c   : > { %p2180_p6 = scmp.lt.u32.totalorder %s2171_s14, %s2454_s22 }
  0x4d   : > { %p2174_p12 = pnand %p2173_p11, %p2172_p10  ;;  %p2179_p3 = por %p2178_p2, %p2177_p0 }
  0x4f   : > { %p2175_p13 = pneg %p2174_p12  ;;  %p2181_p9 = por %p2180_p6, %p2179_p3 }
  0x51   : > { %p2182_p8 = pnand %p2181_p9, %p2175_p13 }
  0x53   : > { %2185 = shalt.err (!%p2182_p8)
}
  0x54   : > { %s2186_s18 = scalar_lea.vmem %s2456_s23, 896  ;;  %s2283_s13 = smov [#allocation2]  }
  0x55   : > { %p2187_p1 = scmp.ne.s32.totalorder %s2456_s23, %s2186_s18  ;;  %s2191_s12 = sshll.u32 %s2283_s13, 4  ;;  %s2192_s12 = int_to_ptr.vmem [resolvable:$false] %s2191_s12 }
  0x56   : > { %s2193_s19 = scalar_lea.vmem %s2192_s12, 1792  ;;  %p2194_p10 = scmp.lt.s32.totalorder %s2456_s23, %s2192_s12 }
  0x57   : > { %p2189_p4 = pnand %p2187_p1, %p2173_p11  ;;  %p2195_p12 = scmp.lt.s32.totalorder %s2193_s19, %s2186_s18 }
  0x59   : > { %p2190_p5 = pneg %p2189_p4  ;;  %p2196_p0 = por %p2195_p12, %p2194_p10 }
  0x5b   : > { %p2197_p2 = pnand %p2196_p0, %p2190_p5 }
  0x5d   : > { %2200 = shalt.err (!%p2197_p2)
}
  0x5e   : > { %2055 = dma.hbm_to_vmem [thread:$0]  (!%p2446_p7), %s2454_s22, 896, %s2456_s23, %s286_s24  }
  0x5f   : > { %s308_s14 = scalar_lea.vmem [#allocation4], %s2030_s26  ;;  %s1520_s20 = smul.u32 2560, %s2277_s30 }
  0x60   : > { %s316_s16 = sshll.u32 %s308_s14, 4  ;;  %s2706_s12 = sand.u32 1, %s2277_s30   ;;  %s2487_s16 = int_to_ptr.vmem [resolvable:$true] %s316_s16 }
  0x61   : > { %s2492_s13 = scalar_lea.hbm %s2689_s1, %s1520_s20  ;;  %s2496_s19 = scalar_lea.sflag [#allocation5], %s2706_s12 }
  0x62   : > { %s2201_s0 = scalar_lea.hbm %s2492_s13, 2560  ;;  %s2206_s22 = scalar_lea.hbm %s2689_s1, 5120 }
  0x63   : > { %p2202_p13 = scmp.ne.s32.totalorder %s2492_s13, %s2201_s0  ;;  %p2207_p9 = scmp.lt.u32.totalorder %s2492_s13, %s2689_s1 }
  0x64   : > { %p2208_p8 = scmp.lt.u32.totalorder %s2206_s22, %s2201_s0  ;;  %p2210_p4 = scmp.lt.u32.totalorder %s2201_s0, %s2492_s13 }
  0x65   : > { %p2204_p3 = pnand %p2202_p13, %p2173_p11 }
  0x66   : > { %p2209_p1 = por %p2208_p8, %p2207_p9 }
  0x67   : > { %p2205_p6 = pneg %p2204_p3 }
  0x68   : > { %p2211_p5 = por %p2210_p4, %p2209_p1 }
  0x6a   : > { %p2212_p10 = pnand %p2211_p5, %p2205_p6 }
  0x6c   : > { %2215 = shalt.err (!%p2212_p10)
}
  0x6d   : > { %s2216_s30 = scalar_lea.vmem %s2487_s16, 2560  ;;  %s2284_s14 = smov [#allocation4]  }
  0x6e   : > { %p2217_p12 = scmp.ne.s32.totalorder %s2487_s16, %s2216_s30  ;;  %s2221_s20 = sshll.u32 %s2284_s14, 4  ;;  %s2222_s20 = int_to_ptr.vmem [resolvable:$false] %s2221_s20 }
  0x6f   : > { %s2223_s21 = scalar_lea.vmem %s2222_s20, 5120  ;;  %p2224_p13 = scmp.lt.s32.totalorder %s2487_s16, %s2222_s20 }
  0x70   : > { %p2219_p0 = pnand %p2217_p12, %p2173_p11  ;;  %p2225_p3 = scmp.lt.s32.totalorder %s2223_s21, %s2216_s30 }
  0x72   : > { %p2220_p2 = pneg %p2219_p0  ;;  %p2226_p9 = por %p2225_p3, %p2224_p13 }
  0x74   : > { %p2227_p8 = pnand %p2226_p9, %p2220_p2 }
  0x76   : > { %2230 = shalt.err (!%p2227_p8)
}
  0x77   : > { %s2285_s0 = smov 512   ;;  %s2286_s18 = smov 32  }
  0x78   : > { %2058 = dma.hbm_to_vmem [thread:$0]  (!%p2446_p7), %s2492_s13, 2560, %s2487_s16, %s2496_s19, %s2285_s0, %s2285_s0, %s2286_s18  }
  0x79   : > { %p2707_p11 = scmp.ne.s32.totalorder %s2702_s11, 0 }
  0x7a   : > { %s330_s12 = sand.u32 (!%p2707_p11), 1, %s2269_s28   ;;  %p2708_p6 = scmp.ne.s32.totalorder (!%p2707_p11), %s2701_s10, 0 }
  0x7b   : > { %328 = sbr.rel (%p2707_p11) target bundleno = 1081 (0x439), region = 52  ;;  %s331_s26 = scalar_lea.sflag (!%p2707_p11), [#allocation3], %s330_s12 }
  0x7c   : > { %s2031_s15 = smul.u32 (!%p2707_p11), 56, %s330_s12 }
  0x7e   : > { %s2525_s22 = scalar_lea.vmem (!%p2707_p11), [#allocation2], %s2031_s15 }
  0x82   : > { %2248 = dma.done.wait (%p2708_p6), %s331_s26, 896  }
  0x83   : > { %2250 = vsyncadd (%p2708_p6), %s331_s26, 4294966400  ;;  %s339_s23 = sand.u32 1, %s2354_s9   ;;  %s2032_s25 = smul.u32 160, %s330_s12 }
  0x84   : > { %s340_s16 = scalar_lea.sflag [#allocation5], %s339_s23 }
  0x85   : > { %s2532_s13 = scalar_lea.vmem [#allocation4], %s2032_s25 }
  0x86   : > { %2252 = dma.done.wait (%p2708_p6), %s340_s16, 2560  }
  0x87   : > { %2254 = vsyncadd (%p2708_p6), %s340_s16, 4294964736  ;;  %p2709_p7 = scmp.eq.s32.totalorder %s2354_s9, 0 }
  0x89   : > { %2256 = dma.done.wait (%p2709_p7), [#allocation5], 14336   ;;  %p2710_p1 = pmov %p2709_p7 }
  0x8b   : > { %2258 = vsyncadd (%p2710_p1), [#allocation5], 4294952960  ;;  %p2711_p4 = pmov %p2710_p1 }
  0x8c   : > { %p2712_p5 = pmov %p2710_p1 }
  0x8d   : > { %2260 = dma.done.wait (%p2711_p4), [#allocation8], 8192  }
  0x8e   : > { %2262 = vsyncadd (%p2712_p5), [#allocation8], 4294959104  ;;  %v419_v0 = vld [vmem:[#allocation6 + $0x80] sm:$0xff]  ;;  %v420_v1 = vld [vmem:[#allocation6 + $0x88] sm:$0xff]  ;;  %vm2288_vm0 = vmmov 0   ;;  %vm805_vm1 = vcmask 64512  }
  0x8f   : > { %v403_v2 = vld [vmem:[#allocation6] sm:$0xff]  ;;  %v1830_v3 = vpack.c.bf16 %v420_v1, %v419_v0  ;;  %v404_v4 = vld [vmem:[#allocation6 + $0x8] sm:$0xff]  ;;  %v421_v11 = vld [vmem:[#allocation6 + $0x90] sm:$0xff]  ;;  %vm1265_vm8 = vcmask 326656   ;;  %s390_s20 = smul.u32 5, %s2354_s9  ;;  %vm1371_vm10 = vcmask 7168  }
  0x90   : > { %v451_v5 = vld [vmem:[#allocation6 + $0x180] sm:$0xff]  ;;  %v452_v6 = vld [vmem:[#allocation6 + $0x188] sm:$0xff]  ;;  %v1832_v7 = vpack.c.bf16 %v404_v4, %v403_v2  ;;  %v422_v13 = vld [vmem:[#allocation6 + $0x98] sm:$0xff] }
  0x91   : > { %v1862_v8 = vpack.c.bf16 %v452_v6, %v451_v5  ;;  %v435_v9 = vld [vmem:[#allocation6 + $0x100] sm:$0xff]  ;;  %v436_v10 = vld [vmem:[#allocation6 + $0x108] sm:$0xff]  ;;  %1831 = vmatprep.subr.bf16.mxu0 %v1830_v3  ;;  %v405_v14 = vld [vmem:[#allocation6 + $0x10] sm:$0xff]  ;;  %v1834_v16 = vpack.c.bf16 %v422_v13, %v421_v11  ;;  %p391_p10 = scmp.lt.s32.totalorder %s390_s20, 9 }
  0x92   : > { %v1864_v12 = vpack.c.bf16 %v436_v10, %v435_v9  ;;  %v406_v15 = vld [vmem:[#allocation6 + $0x18] sm:$0xff]  ;;  %1833 = vmatpush3.bf16.msra.mxu0 %v1832_v7  ;;  %v453_v18 = vld [vmem:[#allocation6 + $0x190] sm:$0xff]  ;;  %v423_v23 = vld [vmem:[#allocation6 + $0xa0] sm:$0xff] }
  0x93   : > { %1863 = vmatprep.subr.bf16.mxu1 %v1862_v8  ;;  %v1836_v17 = vpack.c.bf16 %v406_v15, %v405_v14  ;;  %v454_v19 = vld [vmem:[#allocation6 + $0x198] sm:$0xff]  ;;  %v437_v20 = vld [vmem:[#allocation6 + $0x110] sm:$0xff]  ;;  %v424_v24 = vld [vmem:[#allocation6 + $0xa8] sm:$0xff]  ;;  %1835 = vmatprep.subr.bf16.mxu0 %v1834_v16  ;;  %s2719_s20 = smov (!%p391_p10, %s390_s20), 9 }
  0x94   : > { %1865 = vmatpush3.bf16.msra.mxu1 %v1864_v12  ;;  %v1866_v21 = vpack.c.bf16 %v454_v19, %v453_v18  ;;  %v438_v22 = vld [vmem:[#allocation6 + $0x118] sm:$0xff]  ;;  %v1838_v26 = vpack.c.bf16 %v424_v24, %v423_v23  ;;  %v407_v27 = vld [vmem:[#allocation6 + $0x20] sm:$0xff]  ;;  %v408_v28 = vld [vmem:[#allocation6 + $0x28] sm:$0xff]  ;;  %s1498_s21 = sshll.u32 %s2719_s20, 3 }
  0x95   : > { %v1868_v25 = vpack.c.bf16 %v438_v22, %v437_v20  ;;  %v455_v29 = vld [vmem:[#allocation6 + $0x1a0] sm:$0xff]  ;;  %v456_v30 = vld [vmem:[#allocation6 + $0x1a8] sm:$0xff]  ;;  %v1840_v33 = vpack.c.bf16 %v408_v28, %v407_v27  ;;  %v425_v35 = vld [vmem:[#allocation6 + $0xb0] sm:$0xff]  ;;  %s394_s23 = scalar_lea.vmem %s2696_s8, %s1498_s21 }
  0x96   : > { %1867 = vmatprep.subr.bf16.mxu1 %v1866_v21  ;;  %v439_v31 = vld [vmem:[#allocation6 + $0x120] sm:$0xff]  ;;  %v440_v32 = vld [vmem:[#allocation6 + $0x128] sm:$0xff]  ;;  %1837 = vmatpush3.bf16.msra.mxu0 %v1836_v17  ;;  %v1870_v34 = vpack.c.bf16 %v456_v30, %v455_v29  ;;  %v426_v36 = vld [vmem:[#allocation6 + $0xb8] sm:$0xff] }
  0x97   : > { %v409_v37 = vld [vmem:[#allocation6 + $0x30] sm:$0xff]  ;;  %1839 = vmatprep.subr.bf16.mxu0 %v1838_v26  ;;  %v1872_v38 = vpack.c.bf16 %v440_v32, %v439_v31  ;;  %v1842_v39 = vpack.c.bf16 %v426_v36, %v425_v35  ;;  %v410_v40 = vld [vmem:[#allocation6 + $0x38] sm:$0xff]  ;;  %v427_v46 = vld [vmem:[#allocation6 + $0xc0] sm:$0xff] }
  0x98   : > { %1869 = vmatpush3.bf16.msra.mxu1 %v1868_v25  ;;  %v457_v41 = vld [vmem:[#allocation6 + $0x1b0] sm:$0xff]  ;;  %v458_v42 = vld [vmem:[#allocation6 + $0x1b8] sm:$0xff]  ;;  %v428_v47 = vld [vmem:[#allocation6 + $0xc8] sm:$0xff]  ;;  %v1844_v48 = vpack.c.bf16 %v410_v40, %v409_v37 }
  0x99   : > { %1871 = vmatprep.subr.bf16.mxu1 %v1870_v34  ;;  %v1874_v43 = vpack.c.bf16 %v458_v42, %v457_v41  ;;  %v441_v44 = vld [vmem:[#allocation6 + $0x130] sm:$0xff]  ;;  %v442_v45 = vld [vmem:[#allocation6 + $0x138] sm:$0xff]  ;;  %v459_v49 = vld [vmem:[#allocation6 + $0x1c0] sm:$0xff]  ;;  %v1846_v52 = vpack.c.bf16 %v428_v47, %v427_v46 }
  0x9a   : > { %1841 = vmatpush3.bf16.msra.mxu0 %v1840_v33  ;;  %v460_v50 = vld [vmem:[#allocation6 + $0x1c8] sm:$0xff]  ;;  %v1876_v51 = vpack.c.bf16 %v442_v45, %v441_v44  ;;  %v411_v53 = vld [vmem:[#allocation6 + $0x40] sm:$0xff]  ;;  %v429_v58 = vld [vmem:[#allocation6 + $0xd0] sm:$0xff] }
  0x9b   : > { %1843 = vmatprep.subr.bf16.mxu0 %v1842_v39  ;;  %v412_v54 = vld [vmem:[#allocation6 + $0x48] sm:$0xff]  ;;  %v443_v55 = vld [vmem:[#allocation6 + $0x140] sm:$0xff]  ;;  %v1878_v56 = vpack.c.bf16 %v460_v50, %v459_v49  ;;  %v430_v59 = vld [vmem:[#allocation6 + $0xd8] sm:$0xff] }
  0x9c   : > { %1873 = vmatpush3.bf16.msra.mxu1 %v1872_v38  ;;  %v444_v57 = vld [vmem:[#allocation6 + $0x148] sm:$0xff]  ;;  %v461_v60 = vld [vmem:[#allocation6 + $0x1d0] sm:$0xff]  ;;  %v462_v61 = vld [vmem:[#allocation6 + $0x1d8] sm:$0xff]  ;;  %v1848_v62 = vpack.c.bf16 %v412_v54, %v411_v53  ;;  %v1850_v0 = vpack.c.bf16 %v430_v59, %v429_v58 }
  0x9d   : > { %1875 = vmatprep.subr.bf16.mxu1 %v1874_v43  ;;  %v1880_v63 = vpack.c.bf16 %v444_v57, %v443_v55  ;;  %v413_v1 = vld [vmem:[#allocation6 + $0x50] sm:$0xff]  ;;  %v414_v2 = vld [vmem:[#allocation6 + $0x58] sm:$0xff]  ;;  %v1882_v4 = vpack.c.bf16 %v462_v61, %v461_v60  ;;  %v431_v6 = vld [vmem:[#allocation6 + $0xe0] sm:$0xff] }
  0x9e   : > { %1845 = vmatpush3.bf16.msra.mxu0 %v1844_v48  ;;  %v445_v3 = vld [vmem:[#allocation6 + $0x150] sm:$0xff]  ;;  %v446_v5 = vld [vmem:[#allocation6 + $0x158] sm:$0xff]  ;;  %v432_v7 = vld [vmem:[#allocation6 + $0xe8] sm:$0xff]  ;;  %v1852_v10 = vpack.c.bf16 %v414_v2, %v413_v1  ;;  %v2289_v1 = vmov 0.0  }
  0x9f   : > { %1847 = vmatprep.subr.bf16.mxu0 %v1846_v52  ;;  %v463_v8 = vld [vmem:[#allocation6 + $0x1e0] sm:$0xff]  ;;  %v464_v9 = vld [vmem:[#allocation6 + $0x1e8] sm:$0xff]  ;;  %v397_v12 = vld [vmem:[%s2525_s22 + $0x8] sm:$0xff]  ;;  %v1884_v13 = vpack.c.bf16 %v446_v5, %v445_v3  ;;  %v1854_v14 = vpack.c.bf16 %v432_v7, %v431_v6 }
  0xa0   : > { %1877 = vmatpush3.bf16.msra.mxu1 %v1876_v51  ;;  %v415_v11 = vld [vmem:[#allocation6 + $0x60] sm:$0xff]  ;;  %v416_v15 = vld [vmem:[#allocation6 + $0x68] sm:$0xff]  ;;  %v1886_v18 = vpack.c.bf16 %v464_v9, %v463_v8  ;;  %v433_v19 = vld [vmem:[#allocation6 + $0xf0] sm:$0xff]  ;;  %584 = vmatprep.mubr.f32.mxu0 %v397_v12  ;;  %v2287_v51 = vmov 0.0|0.0  }
  0xa1   : > { %1879 = vmatprep.subr.bf16.mxu1 %v1878_v56  ;;  %v447_v16 = vld [vmem:[#allocation6 + $0x160] sm:$0xff]  ;;  %v448_v17 = vld [vmem:[#allocation6 + $0x168] sm:$0xff]  ;;  %v434_v20 = vld [vmem:[#allocation6 + $0xf8] sm:$0xff]  ;;  %v1856_v24 = vpack.c.bf16 %v416_v15, %v415_v11 }
  0xa2   : > { %1849 = vmatpush3.bf16.msra.mxu0 %v1848_v62  ;;  %v399_v21 = vld [vmem:[%s2525_s22 + $0x18] sm:$0xff]  ;;  %v465_v22 = vld [vmem:[#allocation6 + $0x1f0] sm:$0xff]  ;;  %v466_v23 = vld [vmem:[#allocation6 + $0x1f8] sm:$0xff]  ;;  %v1888_v25 = vpack.c.bf16 %v448_v17, %v447_v16  ;;  %v1858_v26 = vpack.c.bf16 %v434_v20, %v433_v19 }
  0xa3   : > { %1851 = vmatprep.subr.bf16.mxu0 %v1850_v0  ;;  %654 = vmatprep.mubr.f32.mxu1 %v399_v21  ;;  %v417_v27 = vld [vmem:[#allocation6 + $0x70] sm:$0xff]  ;;  %v418_v28 = vld [vmem:[#allocation6 + $0x78] sm:$0xff]  ;;  %v1890_v30 = vpack.c.bf16 %v466_v23, %v465_v22  ;;  %v483_v32 = vld [vmem:[#allocation6 + $0x280] sm:$0xff] }
  0xa4   : > { %1881 = vmatpush3.bf16.msra.mxu1 %v1880_v63  ;;  %v449_v29 = vld [vmem:[#allocation6 + $0x170] sm:$0xff]  ;;  %v450_v31 = vld [vmem:[#allocation6 + $0x178] sm:$0xff]  ;;  %v484_v33 = vld [vmem:[#allocation6 + $0x288] sm:$0xff]  ;;  %v1860_v34 = vpack.c.bf16 %v418_v28, %v417_v27 }
  0xa5   : > { %1883 = vmatprep.subr.bf16.mxu1 %v1882_v4  ;;  %v1892_v35 = vpack.c.bf16 %v450_v31, %v449_v29  ;;  %v1894_v36 = vpack.c.bf16 %v484_v33, %v483_v32  ;;  %v467_v37 = vld [vmem:[#allocation6 + $0x200] sm:$0xff]  ;;  %v468_v38 = vld [vmem:[#allocation6 + $0x208] sm:$0xff]  ;;  %v485_v39 = vld [vmem:[#allocation6 + $0x290] sm:$0xff] }
  0xa6   : > { %1853 = vmatpush3.bf16.msra.mxu0 %v1852_v10  ;;  %v486_v40 = vld [vmem:[#allocation6 + $0x298] sm:$0xff]  ;;  %v499_v41 = vld [vmem:[#allocation6 + $0x300] sm:$0xff]  ;;  %v500_v42 = vld [vmem:[#allocation6 + $0x308] sm:$0xff]  ;;  %v1896_v44 = vpack.c.bf16 %v468_v38, %v467_v37 }
  0xa7   : > { %1855 = vmatprep.subr.bf16.mxu0 %v1854_v14  ;;  %v396_v43 = vld [vmem:[%s2525_s22] sm:$0xff]  ;;  %v398_v45 = vld [vmem:[%s2525_s22 + $0x10] sm:$0xff]  ;;  %v1898_v46 = vpack.c.bf16 %v486_v40, %v485_v39  ;;  %v1927_v49 = vpack.c.bf16 %v500_v42, %v499_v41  ;;  %v401_v0 = vld [vmem:[%s2525_s22 + $0x28] sm:$0xff] }
  0xa8   : > { %1885 = vmatpush3.bf16.msra.mxu1 %v1884_v13  ;;  %v469_v47 = vld [vmem:[#allocation6 + $0x210] sm:$0xff]  ;;  %v470_v48 = vld [vmem:[#allocation6 + $0x218] sm:$0xff]  ;;  %v487_v50 = vld [vmem:[#allocation6 + $0x2a0] sm:$0xff] }
  0xa9   : > { %1887 = vmatprep.subr.bf16.mxu1 %v1886_v18  ;;  %v488_v52 = vld [vmem:[#allocation6 + $0x2a8] sm:$0xff]  ;;  %v501_v53 = vld [vmem:[#allocation6 + $0x310] sm:$0xff]  ;;  %v502_v54 = vld [vmem:[#allocation6 + $0x318] sm:$0xff]  ;;  %v1900_v55 = vpack.c.bf16 %v470_v48, %v469_v47 }
  0xaa   : > { %1857 = vmatpush3.bf16.msra.mxu0 %v1856_v24  ;;  %v471_v56 = vld [vmem:[#allocation6 + $0x220] sm:$0xff]  ;;  %v1902_v57 = vpack.c.bf16 %v488_v52, %v487_v50  ;;  %v472_v58 = vld [vmem:[#allocation6 + $0x228] sm:$0xff]  ;;  %v1930_v59 = vpack.c.bf16 %v502_v54, %v501_v53  ;;  %v489_v60 = vld [vmem:[#allocation6 + $0x2b0] sm:$0xff] }
  0xab   : > { %1859 = vmatprep.subr.bf16.mxu0 %v1858_v26  ;;  %v490_v61 = vld [vmem:[#allocation6 + $0x2b8] sm:$0xff]  ;;  %v503_v62 = vld [vmem:[#allocation6 + $0x320] sm:$0xff]  ;;  %v504_v63 = vld [vmem:[#allocation6 + $0x328] sm:$0xff]  ;;  %v1904_v2 = vpack.c.bf16 %v472_v58, %v471_v56 }
  0xac   : > { %1889 = vmatpush3.bf16.msra.mxu1 %v1888_v25  ;;  %v1906_v3 = vpack.c.bf16 %v490_v61, %v489_v60  ;;  %v473_v4 = vld [vmem:[#allocation6 + $0x230] sm:$0xff]  ;;  %v474_v5 = vld [vmem:[#allocation6 + $0x238] sm:$0xff]  ;;  %v1933_v6 = vpack.c.bf16 %v504_v63, %v503_v62  ;;  %v491_v7 = vld [vmem:[#allocation6 + $0x2c0] sm:$0xff] }
  0xad   : > { %1891 = vmatprep.subr.bf16.mxu1 %v1890_v30  ;;  %v492_v8 = vld [vmem:[#allocation6 + $0x2c8] sm:$0xff]  ;;  %v505_v9 = vld [vmem:[#allocation6 + $0x330] sm:$0xff]  ;;  %v506_v10 = vld [vmem:[#allocation6 + $0x338] sm:$0xff]  ;;  %v1908_v11 = vpack.c.bf16 %v474_v5, %v473_v4 }
  0xae   : > { %1861 = vmatpush3.bf16.msra.mxu0 %v1860_v34  ;;  %v1910_v12 = vpack.c.bf16 %v492_v8, %v491_v7  ;;  %v475_v13 = vld [vmem:[#allocation6 + $0x240] sm:$0xff]  ;;  %v476_v14 = vld [vmem:[#allocation6 + $0x248] sm:$0xff]  ;;  %v1936_v15 = vpack.c.bf16 %v506_v10, %v505_v9  ;;  %v493_v16 = vld [vmem:[#allocation6 + $0x2d0] sm:$0xff] }
  0xaf   : > { %1895 = vmatprep.subr.bf16.mxu0 %v1894_v36  ;;  %v494_v17 = vld [vmem:[#allocation6 + $0x2d8] sm:$0xff]  ;;  %v507_v18 = vld [vmem:[#allocation6 + $0x340] sm:$0xff]  ;;  %v508_v19 = vld [vmem:[#allocation6 + $0x348] sm:$0xff]  ;;  %v1912_v20 = vpack.c.bf16 %v476_v14, %v475_v13 }
  0xb0   : > { %1893 = vmatpush3.bf16.msra.mxu1 %v1892_v35  ;;  %v1914_v21 = vpack.c.bf16 %v494_v17, %v493_v16  ;;  %v477_v22 = vld [vmem:[#allocation6 + $0x250] sm:$0xff]  ;;  %v478_v23 = vld [vmem:[#allocation6 + $0x258] sm:$0xff]  ;;  %v1939_v24 = vpack.c.bf16 %v508_v19, %v507_v18  ;;  %v495_v25 = vld [vmem:[#allocation6 + $0x2e0] sm:$0xff] }
  0xb1   : > { %1926 = vmatprep.subr.bf16.mxu1 %v2287_v51  ;;  %585 = vmatmul.mubr.f32.vlgmr.msra.gmra.mrb[0].mxu0 %v396_v43  ;;  %v496_v26 = vld [vmem:[#allocation6 + $0x2e8] sm:$0xff]  ;;  %v509_v27 = vld [vmem:[#allocation6 + $0x350] sm:$0xff]  ;;  %v510_v28 = vld [vmem:[#allocation6 + $0x358] sm:$0xff]  ;;  %v1916_v29 = vpack.c.bf16 %v478_v23, %v477_v22 }
  0xb2   : > { %1897 = vmatpush3.bf16.msra.mxu0 %v1896_v44  ;;  %724 = vmatprep.mubr.f32.mxu0 %v401_v0  ;;  %v1918_v30 = vpack.c.bf16 %v496_v26, %v495_v25  ;;  %v479_v31 = vld [vmem:[#allocation6 + $0x260] sm:$0xff]  ;;  %v480_v32 = vld [vmem:[#allocation6 + $0x268] sm:$0xff]  ;;  %v1942_v33 = vpack.c.bf16 %v510_v28, %v509_v27  ;;  %v497_v34 = vld [vmem:[#allocation6 + $0x2f0] sm:$0xff] }
  0xb3   : > { %655 = vmatmul.mubr.f32.vlgmr.msra.gmra.mrb[0].mxu1 %v398_v45  ;;  %1899 = vmatprep.subr.bf16.mxu0 %v1898_v46  ;;  %v498_v35 = vld [vmem:[#allocation6 + $0x2f8] sm:$0xff]  ;;  %v511_v36 = vld [vmem:[#allocation6 + $0x360] sm:$0xff]  ;;  %v512_v37 = vld [vmem:[#allocation6 + $0x368] sm:$0xff]  ;;  %v1920_v38 = vpack.c.bf16 %v480_v32, %v479_v31 }
  0xb4   : > { %1928 = vmatpush3.bf16.msra.mxu1 %v1927_v49  ;;  %1785 = vmatprep.mubr.msk.f32.mxu1 %vm2288_vm0, %v2289_v1  ;;  %v1922_v39 = vpack.c.bf16 %v498_v35, %v497_v34  ;;  %v481_v40 = vld [vmem:[#allocation6 + $0x270] sm:$0xff]  ;;  %v482_v41 = vld [vmem:[#allocation6 + $0x278] sm:$0xff]  ;;  %v1945_v42 = vpack.c.bf16 %v512_v37, %v511_v36  ;;  %v947_v49 = vld [vmem:[#allocation7 + $0x80] sm:$0xff] }
  0xb5   : > { %1929 = vmatprep.subr.bf16.mxu1 %v2287_v51  ;;  %v513_v43 = vld [vmem:[#allocation6 + $0x370] sm:$0xff]  ;;  %v514_v44 = vld [vmem:[#allocation6 + $0x378] sm:$0xff]  ;;  %v1924_v45 = vpack.c.bf16 %v482_v41, %v481_v40  ;;  %v948_v50 = vld [vmem:[#allocation7 + $0x88] sm:$0xff] }
  0xb6   : > { %1901 = vmatpush3.bf16.msra.mxu0 %v1900_v55  ;;  %v1948_v46 = vpack.c.bf16 %v514_v44, %v513_v43  ;;  %v400_v47 = vld [vmem:[%s2525_s22 + $0x20] sm:$0xff]  ;;  %v402_v48 = vld [vmem:[%s2525_s22 + $0x30] sm:$0xff]  ;;  %v1950_v52 = vpack.c.bf16 %v948_v50, %v947_v49 }
  0xb7   : > { %1903 = vmatprep.subr.bf16.mxu0 %v1902_v57  ;;  %v931_v53 = vld [vmem:[#allocation7] sm:$0xff]  ;;  %v932_v54 = vld [vmem:[#allocation7 + $0x8] sm:$0xff]  ;;  %v949_v56 = vld [vmem:[#allocation7 + $0x90] sm:$0xff] }
  0xb8   : > { %1931 = vmatpush3.bf16.msra.mxu1 %v1930_v59  ;;  %v1952_v55 = vpack.c.bf16 %v932_v54, %v931_v53  ;;  %v950_v57 = vld [vmem:[#allocation7 + $0x98] sm:$0xff]  ;;  %v933_v59 = vld [vmem:[#allocation7 + $0x10] sm:$0xff]  ;;  %v951_v62 = vld [vmem:[#allocation7 + $0xa0] sm:$0xff] }
  0xb9   : > { %1932 = vmatprep.subr.bf16.mxu1 %v2287_v51  ;;  %v1954_v58 = vpack.c.bf16 %v950_v57, %v949_v56  ;;  %v934_v60 = vld [vmem:[#allocation7 + $0x18] sm:$0xff]  ;;  %v952_v63 = vld [vmem:[#allocation7 + $0xa8] sm:$0xff]  ;;  %v953_v5 = vld [vmem:[#allocation7 + $0xb0] sm:$0xff] }
  0xba   : > { %1905 = vmatpush3.bf16.msra.mxu0 %v1904_v2  ;;  %v1956_v61 = vpack.c.bf16 %v934_v60, %v933_v59  ;;  %v1958_v0 = vpack.c.bf16 %v952_v63, %v951_v62  ;;  %v935_v2 = vld [vmem:[#allocation7 + $0x20] sm:$0xff]  ;;  %v937_v8 = vld [vmem:[#allocation7 + $0x30] sm:$0xff]  ;;  %v938_v9 = vld [vmem:[#allocation7 + $0x38] sm:$0xff] }
  0xbb   : > { %1907 = vmatprep.subr.bf16.mxu0 %v1906_v3  ;;  %v936_v3 = vld [vmem:[#allocation7 + $0x28] sm:$0xff]  ;;  %v1964_v10 = vpack.c.bf16 %v938_v9, %v937_v8  ;;  %v939_v14 = vld [vmem:[#allocation7 + $0x40] sm:$0xff]  ;;  %v957_v17 = vld [vmem:[#allocation7 + $0xd0] sm:$0xff] }
  0xbc   : > { %1934 = vmatpush3.bf16.msra.mxu1 %v1933_v6  ;;  %v1960_v4 = vpack.c.bf16 %v936_v3, %v935_v2  ;;  %v954_v6 = vld [vmem:[#allocation7 + $0xb8] sm:$0xff]  ;;  %v959_v23 = vld [vmem:[#allocation7 + $0xe0] sm:$0xff]  ;;  %v944_v27 = vld [vmem:[#allocation7 + $0x68] sm:$0xff] }
  0xbd   : > { %1935 = vmatprep.subr.bf16.mxu1 %v2287_v51  ;;  %v1962_v7 = vpack.c.bf16 %v954_v6, %v953_v5  ;;  %v958_v18 = vld [vmem:[#allocation7 + $0xd8] sm:$0xff]  ;;  %v943_v26 = vld [vmem:[#allocation7 + $0x60] sm:$0xff]  ;;  %v945_v32 = vld [vmem:[#allocation7 + $0x70] sm:$0xff] }
  0xbe   : > { %1909 = vmatpush3.bf16.msra.mxu0 %v1908_v11  ;;  %v955_v11 = vld [vmem:[#allocation7 + $0xc0] sm:$0xff]  ;;  %v1970_v19 = vpack.c.bf16 %v958_v18, %v957_v17  ;;  %v1976_v28 = vpack.c.bf16 %v944_v27, %v943_v26  ;;  %v912_v35 = vld [vmem:[%s2532_s13 + $0x8] sm:$0xff]  ;;  %v981_v2 = vld [vmem:[#allocation7 + $0x190] sm:$0xff] }
  0xbf   : > { %1911 = vmatprep.subr.bf16.mxu0 %v1910_v12  ;;  %v956_v12 = vld [vmem:[#allocation7 + $0xc8] sm:$0xff]  ;;  %v911_v36 = vld [vmem:[%s2532_s13] sm:$0xff]  ;;  %v982_v3 = vld [vmem:[#allocation7 + $0x198] sm:$0xff] }
  0xc0   : > { %1937 = vmatpush3.bf16.msra.mxu1 %v1936_v15  ;;  %v1966_v13 = vpack.c.bf16 %v956_v12, %v955_v11  ;;  %v940_v15 = vld [vmem:[#allocation7 + $0x48] sm:$0xff]  ;;  %v919_v40 = vld [vmem:[%s2532_s13 + $0x40] sm:$0xff]  ;;  %v800_v6 = vld [vmem:[%s2693_s5] sm:$0xff]  ;;  %v1986_v8 = vpack.c.bf16 %v982_v3, %v981_v2 }
  0xc1   : > { %1938 = vmatprep.subr.bf16.mxu1 %v2287_v51  ;;  %v1968_v16 = vpack.c.bf16 %v940_v15, %v939_v14  ;;  %v916_v37 = vld [vmem:[%s2532_s13 + $0x28] sm:$0xff]  ;;  %v927_v44 = vld [vmem:[%s2532_s13 + $0x80] sm:$0xff]  ;;  %v965_v9 = vld [vmem:[#allocation7 + $0x110] sm:$0xff] }
  0xc2   : > { %1913 = vmatpush3.bf16.msra.mxu0 %v1912_v20  ;;  %v941_v20 = vld [vmem:[#allocation7 + $0x50] sm:$0xff]  ;;  %v924_v41 = vld [vmem:[%s2532_s13 + $0x68] sm:$0xff]  ;;  %v979_v60 = vld [vmem:[#allocation7 + $0x180] sm:$0xff] }
  0xc3   : > { %1915 = vmatprep.subr.bf16.mxu0 %v1914_v21  ;;  %v942_v21 = vld [vmem:[#allocation7 + $0x58] sm:$0xff]  ;;  %v928_v43 = vld [vmem:[%s2532_s13 + $0x88] sm:$0xff]  ;;  %v963_v62 = vld [vmem:[#allocation7 + $0x100] sm:$0xff] }
  0xc4   : > { %1940 = vmatpush3.bf16.msra.mxu1 %v1939_v24  ;;  %v1972_v22 = vpack.c.bf16 %v942_v21, %v941_v20  ;;  %v960_v24 = vld [vmem:[#allocation7 + $0xe8] sm:$0xff]  ;;  %v983_v11 = vld [vmem:[#allocation7 + $0x1a0] sm:$0xff]  ;;  %v801_v14 = vld [vmem:[%s2693_s5 + $0x8] sm:$0xff] }
  0xc5   : > { %1941 = vmatprep.subr.bf16.mxu1 %v2287_v51  ;;  %v1974_v25 = vpack.c.bf16 %v960_v24, %v959_v23  ;;  %v964_v63 = vld [vmem:[#allocation7 + $0x108] sm:$0xff]  ;;  %v985_v18 = vld [vmem:[#allocation7 + $0x1b0] sm:$0xff]  ;;  %v802_v21 = vld [vmem:[%s2693_s5 + $0x10] sm:$0xff] }
  0xc6   : > { %1917 = vmatpush3.bf16.msra.mxu0 %v1916_v29  ;;  %v961_v29 = vld [vmem:[#allocation7 + $0xf0] sm:$0xff]  ;;  %v984_v12 = vld [vmem:[#allocation7 + $0x1a8] sm:$0xff]  ;;  %v970_v24 = vld [vmem:[#allocation7 + $0x138] sm:$0xff] }
  0xc7   : > { %1919 = vmatprep.subr.bf16.mxu0 %v1918_v30  ;;  %v962_v30 = vld [vmem:[#allocation7 + $0xf8] sm:$0xff]  ;;  %v1990_v15 = vpack.c.bf16 %v984_v12, %v983_v11  ;;  %v968_v17 = vld [vmem:[#allocation7 + $0x128] sm:$0xff]  ;;  %v969_v23 = vld [vmem:[#allocation7 + $0x130] sm:$0xff] }
  0xc8   : > { %1943 = vmatpush3.bf16.msra.mxu1 %v1942_v33  ;;  %v1978_v31 = vpack.c.bf16 %v962_v30, %v961_v29  ;;  %v946_v33 = vld [vmem:[#allocation7 + $0x78] sm:$0xff]  ;;  %v988_v26 = vld [vmem:[#allocation7 + $0x1c8] sm:$0xff]  ;;  %v1996_v27 = vpack.c.bf16 %v970_v24, %v969_v23  ;;  %v971_v30 = vld [vmem:[#allocation7 + $0x140] sm:$0xff] }
  0xc9   : > { %1944 = vmatprep.subr.bf16.mxu1 %v2287_v51  ;;  %v1980_v34 = vpack.c.bf16 %v946_v33, %v945_v32  ;;  %v989_v32 = vld [vmem:[#allocation7 + $0x1d0] sm:$0xff]  ;;  %v990_v33 = vld [vmem:[#allocation7 + $0x1d8] sm:$0xff] }
  0xca   : > { %1921 = vmatpush3.bf16.msra.mxu0 %v1920_v38  ;;  %v915_v38 = vld [vmem:[%s2532_s13 + $0x20] sm:$0xff] }
  0xcb   : > { %1923 = vmatprep.subr.bf16.mxu0 %v1922_v39  ;;  %v920_v39 = vld [vmem:[%s2532_s13 + $0x48] sm:$0xff] }
  0xcc   : > { %1946 = vmatpush3.bf16.msra.mxu1 %v1945_v42  ;;  %v923_v42 = vld [vmem:[%s2532_s13 + $0x60] sm:$0xff] }
  0xcd   : > { %1947 = vmatprep.subr.bf16.mxu1 %v2287_v51 }
  0xce   : > { %1925 = vmatpush3.bf16.msra.mxu0 %v1924_v45 }
  0xcf   : > { %1788 = vmatprep.subr.mxu0 %v2289_v1 }
  0xd0   : > { %1949 = vmatpush3.bf16.msra.mxu1 %v1948_v46  ;;  %v1499_v46 = vld [vmem:[%s2692_s4] ss:$0 sm:$0xff] }
  0xd1   : > { %725 = vmatmul.mubr.f32.vlgmr.msra.gmra.mrb[2].mxu0 %v400_v47  ;;  %1951 = vmatprep.subr.bf16.mxu1 %v1950_v52 }
  0xd2   : > { %1790 = vmatprep.mubr.msk.f32.mxu0 %vm2288_vm0, %v2289_v1 }
  0xd3   : > { %1786 = vmatmul.mubr.f32.vlgmr.msra.gmra.mrb[2].mxu1 %v402_v48 }
  0xd4   : > { %1953 = vmatpush3.bf16.msra.mxu1 %v1952_v55  ;;  %1064 = vmatprep.mubr.f32.mxu1 %v912_v35  ;;  %v804_v35 = vld [vmem:[%s2693_s5 + $0x20] sm:$0xff] }
  0xd5   : > { %1955 = vmatprep.subr.bf16.mxu1 %v1954_v58 }
  0xd8   : > { %1957 = vmatpush3.bf16.msra.mxu1 %v1956_v61  ;;  %v980_v61 = vld [vmem:[#allocation7 + $0x188] sm:$0xff] }
  0xd9   : > { %1959 = vmatprep.subr.bf16.mxu1 %v1958_v0 }
  0xdc   : > { %1961 = vmatpush3.bf16.msra.mxu1 %v1960_v4  ;;  %v1982_v4 = vpack.c.bf16 %v980_v61, %v979_v60  ;;  %v925_v60 = vld [vmem:[%s2532_s13 + $0x70] sm:$0xff]  ;;  %v930_v61 = vld [vmem:[%s2532_s13 + $0x98] sm:$0xff] }
  0xdd   : > { %1963 = vmatprep.subr.bf16.mxu1 %v1962_v7  ;;  %v1984_v7 = vpack.c.bf16 %v964_v63, %v963_v62  ;;  %v929_v62 = vld [vmem:[%s2532_s13 + $0x90] sm:$0xff] }
  0xe0   : > { %1965 = vmatpush3.bf16.msra.mxu1 %v1964_v10  ;;  %v966_v10 = vld [vmem:[#allocation7 + $0x118] sm:$0xff] }
  0xe1   : > { %1967 = vmatprep.subr.bf16.mxu1 %v1966_v13  ;;  %v1988_v13 = vpack.c.bf16 %v966_v10, %v965_v9 }
  0xe4   : > { %1969 = vmatpush3.bf16.msra.mxu1 %v1968_v16  ;;  %v967_v16 = vld [vmem:[#allocation7 + $0x120] sm:$0xff] }
  0xe5   : > { %1971 = vmatprep.subr.bf16.mxu1 %v1970_v19  ;;  %v986_v19 = vld [vmem:[#allocation7 + $0x1b8] sm:$0xff]  ;;  %v1992_v20 = vpack.c.bf16 %v968_v17, %v967_v16 }
  0xe8   : > { %1973 = vmatpush3.bf16.msra.mxu1 %v1972_v22  ;;  %v1994_v22 = vpack.c.bf16 %v986_v19, %v985_v18 }
  0xe9   : > { %1975 = vmatprep.subr.bf16.mxu1 %v1974_v25  ;;  %v987_v25 = vld [vmem:[#allocation7 + $0x1c0] sm:$0xff] }
  0xea   : > { %v1998_v29 = vpack.c.bf16 %v988_v26, %v987_v25 }
  0xec   : > { %1977 = vmatpush3.bf16.msra.mxu1 %v1976_v28  ;;  %v803_v28 = vld [vmem:[%s2693_s5 + $0x18] sm:$0xff] }
  0xed   : > { %1979 = vmatprep.subr.bf16.mxu1 %v1978_v31  ;;  %v972_v31 = vld [vmem:[#allocation7 + $0x148] sm:$0xff] }
  0xf0   : > { %1981 = vmatpush3.bf16.msra.mxu1 %v1980_v34  ;;  %v2000_v34 = vpack.c.bf16 %v972_v31, %v971_v30 }
  0xf1   : > { %2022 = vmatprep.subr.bf16.mxu1 %v2287_v51 }
  0xf3   : > { %1065 = vmatmul.mubr.f32.vlgmr.msra.gmra.mrb[4].mxu1 %v911_v36  ;;  %v2002_v36 = vpack.c.bf16 %v990_v33, %v989_v32 }
  0xf4   : > { %1069 = vmatprep.mubr.f32.mxu1 %v916_v37  ;;  %v973_v37 = vld [vmem:[#allocation7 + $0x150] sm:$0xff] }
  0xf7   : > { %1070 = vmatmul.mubr.f32.gmra.mrb[6].mxu1 %v915_v38  ;;  %v974_v38 = vld [vmem:[#allocation7 + $0x158] sm:$0xff] }
  0xf8   : > { %1074 = vmatprep.mubr.f32.mxu1 %v920_v39  ;;  %v914_v39 = vld [vmem:[%s2532_s13 + $0x18] sm:$0xff] }
  0xfb   : > { %1075 = vmatmul.mubr.f32.gmra.mrb[8].mxu1 %v919_v40  ;;  %v991_v40 = vld [vmem:[#allocation7 + $0x1e0] sm:$0xff] }
  0xfc   : > { %1079 = vmatprep.mubr.f32.mxu1 %v924_v41  ;;  %v992_v41 = vld [vmem:[#allocation7 + $0x1e8] sm:$0xff] }
  0xff   : > { %1080 = vmatmul.mubr.f32.gmra.mrb[10].mxu1 %v923_v42  ;;  %v2004_v42 = vpack.c.bf16 %v974_v38, %v973_v37 }
 0x100   : > { %1084 = vmatprep.mubr.f32.mxu1 %v928_v43  ;;  %v2006_v43 = vpack.c.bf16 %v992_v41, %v991_v40 }
 0x103   : > { %1085 = vmatmul.mubr.f32.gmra.mrb[12].mxu1 %v927_v44  ;;  %v975_v44 = vld [vmem:[#allocation7 + $0x160] sm:$0xff] }
 0x104   : > { %1821 = vmatprep.mubr.msk.f32.mxu1 %vm2288_vm0, %v2289_v1 }
 0x184   : > { %v1553_v45 = vpop.f32.mrb[0].mxu0 }
 0x185   : > { %v1554_v47 = vpop.f32.mrb[1].mxu0 }
 0x186   : > { %v1588_v48 = vpop.f32.mrb[0].mxu1  ;;  %v1555_v49 = vadd.f32 %v1554_v47, %v1553_v45  ;;  %v976_v45 = vld [vmem:[#allocation7 + $0x168] sm:$0xff]  ;;  %v994_v47 = vld [vmem:[#allocation7 + $0x1f8] sm:$0xff] }
 0x187   : > { %v1589_v50 = vpop.f32.mrb[1].mxu1 }
 0x188   : > { %v1590_v52 = vadd.f32 %v1589_v50, %v1588_v48  ;;  %v587_v53 = vadd.f32 %v1555_v49, %v1499_v46  ;;  %v993_v46 = vld [vmem:[#allocation7 + $0x1f0] sm:$0xff]  ;;  %v2008_v48 = vpack.c.bf16 %v976_v45, %v975_v44 }
 0x189   : > { %v2010_v49 = vpack.c.bf16 %v994_v47, %v993_v46  ;;  %v977_v50 = vld [vmem:[#allocation7 + $0x170] sm:$0xff] }
 0x18a   : > { %v657_v54 = vadd.f32 %v1590_v52, %v587_v53  ;;  %v978_v52 = vld [vmem:[#allocation7 + $0x178] sm:$0xff] }
 0x18b   : > { %v2012_v53 = vpack.c.bf16 %v978_v52, %v977_v50 }
 0x1a4   : > { %v1623_v55 = vpop.f32.mrb[2].mxu0 }
 0x1a5   : > { %v1624_v56 = vpop.f32.mrb[3].mxu0 }
 0x1a6   : > { %v796_v57 = vpop.f32.mrb[2].mxu1  ;;  %v1625_v58 = vadd.f32 %v1624_v56, %v1623_v55  ;;  %v918_v55 = vld [vmem:[%s2532_s13 + $0x38] sm:$0xff]  ;;  %v917_v56 = vld [vmem:[%s2532_s13 + $0x30] sm:$0xff] }
 0x1a7   : > { %v1787_v59 = vpop.f32.mrb[3].mxu1 }
 0x1a8   : > { %v727_v0 = vadd.f32 %v1625_v58, %v657_v54  ;;  %v913_v54 = vld [vmem:[%s2532_s13 + $0x10] sm:$0xff]  ;;  %v926_v59 = vld [vmem:[%s2532_s13 + $0x78] sm:$0xff] }
 0x1a9   : > { %v921_v58 = vld [vmem:[%s2532_s13 + $0x50] sm:$0xff] }
 0x1aa   : > { %v797_v5 = vadd.f32 %v796_v57, %v727_v0  ;;  %v922_v57 = vld [vmem:[%s2532_s13 + $0x58] sm:$0xff] }
 0x1ac   : > { %1789 = vmatpush3.msra.mxu0 %v797_v5 }
 0x1ad   : > { %1791 = vmatmul.mubr.msk.f32.vlgmr.msra.gmra.mrb[4].mxu0 %vm805_vm1, %v800_v6  ;;  %1983 = vmatprep.subr.bf16.mxu0 %v1982_v4 }
 0x1ae   : > { %1985 = vmatpush3.bf16.msra.mxu0 %v1984_v7  ;;  %1793 = vmatprep.mubr.msk.f32.mxu0 %vm2288_vm0, %v2289_v1 }
 0x1af   : > { %1987 = vmatprep.subr.bf16.mxu0 %v1986_v8 }
 0x1b1   : > { %1794 = vmatmul.mubr.msk.f32.gmra.mrb[6].mxu0 %vm805_vm1, %v801_v14 }
 0x1b2   : > { %1989 = vmatpush3.bf16.msra.mxu0 %v1988_v13  ;;  %1796 = vmatprep.mubr.msk.f32.mxu0 %vm2288_vm0, %v2289_v1 }
 0x1b3   : > { %1991 = vmatprep.subr.bf16.mxu0 %v1990_v15 }
 0x1b5   : > { %1797 = vmatmul.mubr.msk.f32.gmra.mrb[8].mxu0 %vm805_vm1, %v802_v21 }
 0x1b6   : > { %1993 = vmatpush3.bf16.msra.mxu0 %v1992_v20  ;;  %1799 = vmatprep.mubr.msk.f32.mxu0 %vm2288_vm0, %v2289_v1 }
 0x1b7   : > { %1995 = vmatprep.subr.bf16.mxu0 %v1994_v22 }
 0x1b9   : > { %1800 = vmatmul.mubr.msk.f32.gmra.mrb[10].mxu0 %vm805_vm1, %v803_v28 }
 0x1ba   : > { %1997 = vmatpush3.bf16.msra.mxu0 %v1996_v27  ;;  %1802 = vmatprep.mubr.msk.f32.mxu0 %vm2288_vm0, %v2289_v1 }
 0x1bb   : > { %1999 = vmatprep.subr.bf16.mxu0 %v1998_v29  ;;  %v1505_v29 = vld [vmem:[%s2692_s4 + $0x1] ss:$0 sm:$0xff] }
 0x1bd   : > { %1803 = vmatmul.mubr.msk.f32.gmra.mrb[12].mxu0 %vm805_vm1, %v804_v35 }
 0x1be   : > { %2001 = vmatpush3.bf16.msra.mxu0 %v2000_v34  ;;  %1154 = vmatprep.mubr.f32.mxu0 %v914_v39 }
 0x1bf   : > { %2003 = vmatprep.subr.bf16.mxu0 %v2002_v36 }
 0x1c2   : > { %2005 = vmatpush3.bf16.msra.mxu0 %v2004_v42 }
 0x1c3   : > { %2007 = vmatprep.subr.bf16.mxu0 %v2006_v43 }
 0x1c6   : > { %2009 = vmatpush3.bf16.msra.mxu0 %v2008_v48  ;;  %v1681_v63 = vpop.f32.mrb[4].mxu1 }
 0x1c7   : > { %2011 = vmatprep.subr.bf16.mxu0 %v2010_v49  ;;  %v1682_v0 = vpop.f32.mrb[5].mxu1 }
 0x1c8   : > { %v1683_v2 = vadd.f32 %v1682_v0, %v1681_v63 }
 0x1ca   : > { %2013 = vmatpush3.bf16.msra.mxu0 %v2012_v53  ;;  %v1684_v3 = vpop.f32.mrb[6].mxu1  ;;  %v1067_v30 = vadd.f32 %v1683_v2, %v1505_v29 }
 0x1cb   : > { %2014 = vmatprep.subr.bf16.mxu0 %v2287_v51  ;;  %v1685_v4 = vpop.f32.mrb[7].mxu1 }
 0x1cc   : > { %v1686_v5 = vadd.f32 %v1685_v4, %v1684_v3 }
 0x1cd   : > { %1155 = vmatmul.mubr.f32.vlgmr.msra.gmra.mrb[14].mxu0 %v913_v54 }
 0x1ce   : > { %1159 = vmatprep.mubr.f32.mxu0 %v918_v55  ;;  %v1687_v6 = vpop.f32.mrb[8].mxu1  ;;  %v1072_v35 = vadd.f32 %v1686_v5, %v1505_v29 }
 0x1cf   : > { %v1688_v7 = vpop.f32.mrb[9].mxu1 }
 0x1d0   : > { %v1689_v8 = vadd.f32 %v1688_v7, %v1687_v6 }
 0x1d1   : > { %1160 = vmatmul.mubr.f32.gmra.mrb[16].mxu0 %v917_v56 }
 0x1d2   : > { %1164 = vmatprep.mubr.f32.mxu0 %v922_v57  ;;  %v1690_v9 = vpop.f32.mrb[10].mxu1  ;;  %v1077_v42 = vadd.f32 %v1689_v8, %v1505_v29 }
 0x1d3   : > { %v1691_v10 = vpop.f32.mrb[11].mxu1 }
 0x1d4   : > { %v1692_v11 = vadd.f32 %v1691_v10, %v1690_v9 }
 0x1d5   : > { %1165 = vmatmul.mubr.f32.gmra.mrb[18].mxu0 %v921_v58 }
 0x1d6   : > { %1169 = vmatprep.mubr.f32.mxu0 %v926_v59  ;;  %v1693_v12 = vpop.f32.mrb[12].mxu1  ;;  %v1082_v49 = vadd.f32 %v1692_v11, %v1505_v29 }
 0x1d7   : > { %v1694_v13 = vpop.f32.mrb[13].mxu1 }
 0x1d8   : > { %v1695_v14 = vadd.f32 %v1694_v13, %v1693_v12 }
 0x1d9   : > { %1170 = vmatmul.mubr.f32.gmra.mrb[20].mxu0 %v925_v60 }
 0x1da   : > { %1174 = vmatprep.mubr.f32.mxu0 %v930_v61  ;;  %v1087_v57 = vadd.f32 %v1695_v14, %v1505_v29 }
 0x1dd   : > { %1175 = vmatmul.mubr.f32.gmra.mrb[22].mxu0 %v929_v62 }
 0x1de   : > { %1815 = vmatprep.mubr.msk.f32.mxu0 %vm2288_vm0, %v2289_v1 }
 0x280   : > { %v887_v15 = vpop.f32.mrb[4].mxu0 }
 0x281   : > { %v1792_v16 = vpop.f32.mrb[5].mxu0  ;;  %v1195_v17 = vmul.f32 %v887_v15, %v887_v15 }
 0x283   : > { %1200 = vadd.xlane.f32.xlu0 %v1195_v17 }
 0x284   : > { %v892_v18 = vpop.f32.mrb[6].mxu0 }
 0x285   : > { %v1795_v19 = vpop.f32.mrb[7].mxu0  ;;  %v1196_v20 = vmul.f32 %v892_v18, %v892_v18 }
 0x287   : > { %1202 = vadd.xlane.f32.xlu0 %v1196_v20 }
 0x288   : > { %v897_v21 = vpop.f32.mrb[8].mxu0 }
 0x289   : > { %v1798_v22 = vpop.f32.mrb[9].mxu0  ;;  %v1197_v23 = vmul.f32 %v897_v21, %v897_v21 }
 0x28b   : > { %1204 = vadd.xlane.f32.xlu0 %v1197_v23 }
 0x28c   : > { %v902_v24 = vpop.f32.mrb[10].mxu0 }
 0x28d   : > { %v1801_v25 = vpop.f32.mrb[11].mxu0  ;;  %v1198_v26 = vmul.f32 %v902_v24, %v902_v24 }
 0x28f   : > { %1206 = vadd.xlane.f32.xlu1 %v1198_v26 }
 0x290   : > { %v907_v27 = vpop.f32.mrb[12].mxu0 }
 0x291   : > { %v1804_v28 = vpop.f32.mrb[13].mxu0  ;;  %v1199_v61 = vmul.f32 %v907_v27, %v907_v27 }
 0x2a0   : > { %v1728_v31 = vpop.f32.mrb[14].mxu0 }
 0x2a1   : > { %v1729_v32 = vpop.f32.mrb[15].mxu0 }
 0x2a2   : > { %v1730_v33 = vadd.f32 %v1729_v32, %v1728_v31 }
 0x2a4   : > { %v1157_v34 = vadd.f32 %v1730_v33, %v1067_v30  ;;  %v1731_v36 = vpop.f32.mrb[16].mxu0 }
 0x2a5   : > { %v1732_v37 = vpop.f32.mrb[17].mxu0 }
 0x2a6   : > { %v1733_v38 = vadd.f32 %v1732_v37, %v1731_v36  ;;  %v1210_v39 = vmul.f32 %v1157_v34, %v1157_v34  ;;  %v1180_v40 = vmul.f32 %v1157_v34, %v887_v15 }
 0x2a8   : > { %v1162_v41 = vadd.f32 %v1733_v38, %v1072_v35  ;;  %v1734_v43 = vpop.f32.mrb[18].mxu0  ;;  %1215 = vadd.xlane.f32.xlu1 %v1210_v39 }
 0x2a9   : > { %v1735_v44 = vpop.f32.mrb[19].mxu0 }
 0x2aa   : > { %v1736_v45 = vadd.f32 %v1735_v44, %v1734_v43  ;;  %v1211_v46 = vmul.f32 %v1162_v41, %v1162_v41  ;;  %v1181_v47 = vmul.f32 %v1162_v41, %v892_v18  ;;  %v1255_v41 = vld [vmem:[%s2694_s6] sm:$0xff]  ;;  %v1256_v43 = vld [vmem:[%s2694_s6 + $0x8] sm:$0xff] }
 0x2ab   : > { %v1259_v44 = vld [vmem:[%s2694_s6 + $0x20] sm:$0xff] }
 0x2ac   : > { %v1167_v48 = vadd.f32 %v1736_v45, %v1077_v42  ;;  %v1737_v50 = vpop.f32.mrb[20].mxu0  ;;  %1217 = vadd.xlane.f32.xlu1 %v1211_v46  ;;  %v1258_v42 = vld [vmem:[%s2694_s6 + $0x18] sm:$0xff]  ;;  %v1262_v45 = vld [vmem:[%s2695_s7 + $0x10] sm:$0xff]  ;;  %v1260_v46 = vld [vmem:[%s2695_s7] sm:$0xff] }
 0x2ad   : > { %v1738_v52 = vpop.f32.mrb[21].mxu0 }
 0x2ae   : > { %v1739_v53 = vadd.f32 %v1738_v52, %v1737_v50  ;;  %v1212_v54 = vmul.f32 %v1167_v48, %v1167_v48  ;;  %v1182_v55 = vmul.f32 %v1167_v48, %v897_v21 }
 0x2b0   : > { %v1172_v56 = vadd.f32 %v1739_v53, %v1082_v49  ;;  %v1740_v58 = vpop.f32.mrb[22].mxu0  ;;  %1219 = vadd.xlane.f32.xlu0 %v1212_v54  ;;  %v1263_v53 = vld [vmem:[%s2695_s7 + $0x18] sm:$0xff]  ;;  %v1261_v54 = vld [vmem:[%s2695_s7 + $0x8] sm:$0xff] }
 0x2b1   : > { %v1741_v59 = vpop.f32.mrb[23].mxu0 }
 0x2b2   : > { %v1742_v60 = vadd.f32 %v1741_v59, %v1740_v58  ;;  %v1213_v62 = vmul.f32 %v1172_v56, %v1172_v56  ;;  %v1183_v63 = vmul.f32 %v1172_v56, %v902_v24 }
 0x2b4   : > { %v1177_v0 = vadd.f32 %v1742_v60, %v1087_v57  ;;  %1208 = vadd.xlane.f32.xlu0 %v1199_v61  ;;  %1221 = vadd.xlane.f32.xlu1 %v1213_v62  ;;  %v1264_v61 = vld [vmem:[%s2695_s7 + $0x20] sm:$0xff] }
 0x2b6   : > { %v1214_v2 = vmul.f32 %v1177_v0, %v1177_v0  ;;  %v1184_v3 = vmul.f32 %v1177_v0, %v907_v27 }
 0x2b8   : > { %1223 = vadd.xlane.f32.xlu1 %v1214_v2  ;;  %1185 = vadd.xlane.f32.xlu0 %v1180_v40 }
 0x2bc   : > { %1187 = vadd.xlane.f32.xlu1 %v1181_v47  ;;  %1189 = vadd.xlane.f32.xlu0 %v1182_v55 }
 0x2c0   : > { %1191 = vadd.xlane.f32.xlu1 %v1183_v63  ;;  %1193 = vadd.xlane.f32.xlu0 %v1184_v3 }
 0x310   : > { %v1201_v4 = vpop.xlane.xlu0 %1200 }
 0x314   : > { %v1203_v6 = vpop.xlane.xlu0 %1202 }
 0x318   : > { %v1205_v9 = vpop.xlane.xlu0 %1204 }
 0x31c   : > { %v1207_v5 = vpop.xlane.xlu1 %1206 }
 0x335   : > { %v1216_v7 = vpop.xlane.xlu1 %1215 }
 0x336   : > { %v1225_v8 = vmul.f32 %v1216_v7, %v1201_v4 }
 0x338   : > { %v1235_v10 = vmax.f32 %v1225_v8, 1e-30  ;;  %vm1230_vm3 = vcmp.gt.f32.partialorder %v1225_v8, 0.0 }
 0x339   : > { %v1218_v11 = vpop.xlane.xlu1 %1217 }
 0x33a   : > { %v1226_v12 = vmul.f32 %v1218_v11, %v1203_v6  ;;  %2105 = vrsqrt.f32 %v1235_v10 }
 0x33c   : > { %v1236_v13 = vmax.f32 %v1226_v12, 1e-30  ;;  %vm1231_vm2 = vcmp.gt.f32.partialorder %v1226_v12, 0.0 }
 0x33d   : > { %v1220_v14 = vpop.xlane.xlu0 %1219  ;;  %vm2016_vm4 = vmpackc.low %vm1231_vm2, %vm1230_vm3 }
 0x33e   : > { %2107 = vrsqrt.f32 %v1236_v13  ;;  %v1227_v15 = vmul.f32 %v1220_v14, %v1205_v9 }
 0x340   : > { %v1237_v16 = vmax.f32 %v1227_v15, 1e-30  ;;  %vm1232_vm6 = vcmp.gt.f32.partialorder %v1227_v15, 0.0 }
 0x341   : > { %v1209_v17 = vpop.xlane.xlu0 %1208  ;;  %v1222_v18 = vpop.xlane.xlu1 %1221 }
 0x342   : > { %v1228_v19 = vmul.f32 %v1222_v18, %v1207_v5  ;;  %2109 = vrsqrt.f32 %v1237_v16 }
 0x344   : > { %v1238_v20 = vmax.f32 %v1228_v19, 1e-30  ;;  %v2106_v23 = vpop.eup %2105  ;;  %vm1233_vm5 = vcmp.gt.f32.partialorder %v1228_v19, 0.0 }
 0x345   : > { %v1224_v21 = vpop.xlane.xlu1 %1223  ;;  %v1186_v24 = vpop.xlane.xlu0 %1185  ;;  %vm2020_vm7 = vmpackc.low %vm1233_vm5, %vm1232_vm6 }
 0x346   : > { %2111 = vrsqrt.f32 %v1238_v20  ;;  %v1229_v22 = vmul.f32 %v1224_v21, %v1209_v17  ;;  %v1245_v28 = vmul.f32 %v2106_v23, %v1186_v24 }
 0x348   : > { %v2108_v25 = vpop.eup %2107  ;;  %v1239_v26 = vmax.f32 %v1229_v22, 1e-30  ;;  %vm1234_vm9 = vcmp.gt.f32.partialorder %v1229_v22, 0.0 }
 0x349   : > { %v1188_v27 = vpop.xlane.xlu1 %1187  ;;  %v1190_v33 = vpop.xlane.xlu0 %1189 }
 0x34a   : > { %2113 = vrsqrt.f32 %v1239_v26  ;;  %v1246_v29 = vmul.f32 %v2108_v25, %v1188_v27 }
 0x34c   : > { %v2015_v30 = vpack.c.bf16 %v1246_v29, %v1245_v28  ;;  %v2110_v31 = vpop.eup %2109 }
 0x34d   : > { %v1192_v34 = vpop.xlane.xlu1 %1191  ;;  %v1247_v35 = vmul.f32 %v2110_v31, %v1190_v33  ;;  %v1194_v39 = vpop.xlane.xlu0 %1193 }
 0x34e   : > { %2017 = vmatpush3.bf16.msk.msra.mxu0 %vm2016_vm4, %v2015_v30  ;;  %2025 = vmatpush3.bf16.msk.msra.mxu1 %vm2016_vm4, %v2015_v30 }
 0x34f   : > { %2018 = vmatprep.subr.bf16.mxu0 %v2287_v51  ;;  %2023 = vmatprep.subr.bf16.mxu1 %v2287_v51  ;;  %v1257_v51 = vld [vmem:[%s2694_s6 + $0x10] sm:$0xff] }
 0x350   : > { %v2112_v32 = vpop.eup %2111 }
 0x351   : > { %v1248_v36 = vmul.f32 %v2112_v32, %v1192_v34 }
 0x353   : > { %v2019_v37 = vpack.c.bf16 %v1248_v36, %v1247_v35 }
 0x354   : > { %v2114_v38 = vpop.eup %2113 }
 0x355   : > { %2021 = vmatpush3.bf16.msk.msra.mxu0 %vm2020_vm7, %v2019_v37  ;;  %2026 = vmatpush3.bf16.msk.msra.mxu1 %vm2020_vm7, %v2019_v37  ;;  %v1249_v40 = vmul.f32 %v2114_v38, %v1194_v39 }
 0x356   : > { %1813 = vmatprep.subr.mxu0 %v2289_v1  ;;  %2024 = vmatprep.subr.mxu1 %v2289_v1 }
 0x359   : > { %1814 = vmatpush3.msk.msra.mxu0 %vm1234_vm9, %v1249_v40  ;;  %2027 = vmatpush3.msk.msra.mxu1 %vm1234_vm9, %v1249_v40 }
 0x35a   : > { %1822 = vmatmul.mubr.msk.f32.vlgmr.msra.gmra.mrb[14].mxu1 %vm1265_vm8, %v1257_v51  ;;  %1816 = vmatmul.mubr.msk.f32.vlgmr.msra.gmra.mrb[24].mxu0 %vm1265_vm8, %v1255_v41 }
 0x35b   : > { %1824 = vmatprep.mubr.msk.f32.mxu1 %vm2288_vm0, %v2289_v1  ;;  %1818 = vmatprep.mubr.msk.f32.mxu0 %vm2288_vm0, %v2289_v1 }
 0x35e   : > { %1825 = vmatmul.mubr.msk.f32.gmra.mrb[16].mxu1 %vm1265_vm8, %v1258_v42  ;;  %1819 = vmatmul.mubr.msk.f32.gmra.mrb[26].mxu0 %vm1265_vm8, %v1256_v43 }
 0x35f   : > { %1827 = vmatprep.mubr.msk.f32.mxu1 %vm2288_vm0, %v2289_v1 }
 0x362   : > { %1828 = vmatmul.mubr.msk.f32.gmra.mrb[18].mxu1 %vm1265_vm8, %v1259_v44 }
 0x42d   : > { %v1357_v1 = vpop.f32.mrb[14].mxu1  ;;  %v1347_v47 = vpop.f32.mrb[24].mxu0 }
 0x42e   : > { %v1358_v48 = vadd.f32 %v1357_v1, %v1262_v45  ;;  %v1823_v49 = vpop.f32.mrb[15].mxu1  ;;  %v1348_v50 = vadd.f32 %v1347_v47, %v1260_v46  ;;  %v1817_v52 = vpop.f32.mrb[25].mxu0 }
 0x430   : > { %1374 = vst.msk [vmem:[%s394_s23 + $0x10] sm:$0xff] %vm1371_vm10, %v1358_v48  ;;  %1372 = vst.msk [vmem:[%s394_s23] sm:$0xff] %vm1371_vm10, %v1348_v50 }
 0x431   : > { %v1362_v55 = vpop.f32.mrb[16].mxu1  ;;  %v1352_v56 = vpop.f32.mrb[26].mxu0 }
 0x432   : > { %v1363_v57 = vadd.f32 %v1362_v55, %v1263_v53  ;;  %v1826_v58 = vpop.f32.mrb[17].mxu1  ;;  %v1353_v59 = vadd.f32 %v1352_v56, %v1261_v54  ;;  %v1820_v60 = vpop.f32.mrb[27].mxu0 }
 0x434   : > { %1375 = vst.msk [vmem:[%s394_s23 + $0x18] sm:$0xff] %vm1371_vm10, %v1363_v57  ;;  %1373 = vst.msk [vmem:[%s394_s23 + $0x8] sm:$0xff] %vm1371_vm10, %v1353_v59 }
 0x435   : > { %v1367_v62 = vpop.f32.mrb[18].mxu1 }
 0x436   : > { %v1368_v63 = vadd.f32 %v1367_v62, %v1264_v61  ;;  %v1829_v0 = vpop.f32.mrb[19].mxu1 }
 0x438   : > { %1376 = vst.msk [vmem:[%s394_s23 + $0x20] sm:$0xff] %vm1371_vm10, %v1368_v63 }
 0x439 PF: > { %s2713_s19 = smov %s2428_s27  ;;  %p22_p12 = scmp.ge.s32.totalorder %s2428_s27, 4  }
 0x43a   : > { %s2714_s27 = smov %s2269_s28  ;;  %s2715_s28 = smov %s2273_s29 }
 0x43b   : > { %s2716_s29 = smov %s2441_s17  ;;  %s2717_s30 = smov %s2713_s19 }
 0x43c   :  { %24 = sbr.rel (!%p22_p12) target bundleno = 8 (0x8), region = 113 }
 0x443   :  { %1399 = vsyncpa [#allocation3], 1 }
 0x444   :  { %1401 = vsyncpa [#allocation3 + $0x1], 1 }
 0x445   :  { %1402 = vsyncpa [#allocation5], 1 }
 0x446   :  { %1404 = vsyncpa [#allocation5 + $0x1], 1 }
 0x447   :  { %1405 = vsyncpa [#allocation8], 1 }

</bundles_post_ra>
